<compile_context>
chip_gen: v7x
topology: tpu7x:2x2x1
jax: 0.10.0
libtpu: 0.0.40
codegen_flags: <defaults>
</compile_context>

<pallas_src>
import functools

import jax
import jax.numpy as jnp
from jax import lax
from jax.experimental import pallas as pl
from jax.experimental.pallas import tpu as pltpu

LN_EPS = 1e-5        # nn.LayerNorm default eps
NORM_EPS = 1e-12     # F.normalize default eps


# ------------------------------ fused kernel -------------------------------

def _fused_block_kernel(x_ref, mask_ref, g1_ref, b1_ref, wqkv_ref, wdw_ref,
                        temp_ref, wpo_ref, g2_ref, b2_ref, wpi_ref,
                        o_ref, pad_ref, *, heads, H, W, lpad):
    C = x_ref.shape[1]
    HW = H * W
    ch = C // heads
    C3 = 3 * C
    f32 = jnp.float32
    bf16 = jnp.bfloat16

    x = x_ref[0]                                            # (C, HW) f32

    # ---------------- LayerNorm1 over channels (sublane axis) ---------------
    mu = jnp.mean(x, axis=0, keepdims=True)
    var = jnp.mean((x - mu) ** 2, axis=0, keepdims=True)
    y = (x - mu) * lax.rsqrt(var + LN_EPS) * g1_ref[...] + b1_ref[...]

    # ---------------- qkv 1x1 conv (bf16 MXU, f32 accumulate) ---------------
    qkv = jnp.dot(wqkv_ref[...], y.astype(bf16),
                  preferred_element_type=f32)               # (3C, HW)

    # ---------------- depthwise 3x3 conv on the flat (3C, HW) layout --------
    # Zero-padded flat scratch: vertical (di) out-of-image taps land in the
    # zero pad; horizontal row-wraparound is killed by the left/right masks.
    pad_ref[...] = jnp.zeros(pad_ref.shape, f32)
    pad_ref[:, lpad:lpad + HW] = qkv                        # lane-aligned store
    wdw = wdw_ref[...]                                      # (3C, 9)
    mask_l = mask_ref[0:1, :]                               # (1, HW)
    mask_r = mask_ref[1:2, :]
    conv = jnp.zeros((C3, HW), f32)
    for di in range(3):
        for dj in range(3):
            t = di * 3 + dj
            off = lpad + (di - 1) * W + (dj - 1)
            term = pad_ref[:, off:off + HW] * wdw[:, t:t + 1]
            if dj == 0:
                term = term * mask_l
            elif dj == 2:
                term = term * mask_r
            conv = conv + term

    # ---------------- MDTA attention ----------------------------------------
    q = conv[0:C]                                           # (C, HW)
    k = conv[C:2 * C]
    v = conv[2 * C:3 * C]

    def l2_normalize(t):                                    # over HW (lanes)
        n = jnp.sqrt(jnp.sum(t * t, axis=-1, keepdims=True))
        return t / jnp.maximum(n, NORM_EPS)

    qn = l2_normalize(q)
    kn = l2_normalize(k)
    temp = temp_ref[...]                                    # (heads, 1)
    wpo = wpo_ref[...]                                      # (C, C) bf16

    # per-head attention; head recombination is folded into project_out by
    # accumulating  sum_h  W_po[:, h] @ out_h   (no concat / scratch writes).
    proj = jnp.zeros((C, HW), f32)
    for h in range(heads):
        lo, hi = h * ch, (h + 1) * ch
        qh = qn[lo:hi].astype(bf16)
        kh = kn[lo:hi].astype(bf16)
        vh = v[lo:hi].astype(bf16)
        s = jnp.einsum('cp,dp->cd', qh, kh,
                       preferred_element_type=f32) * temp[h:h + 1, 0:1]
        m = jnp.max(s, axis=-1, keepdims=True)
        e = jnp.exp(s - m)
        attn = e * pl.reciprocal(jnp.sum(e, axis=-1, keepdims=True),
                                 approx=True)
        out_h = jnp.dot(attn.astype(bf16), vh, preferred_element_type=f32)
        proj = proj + jnp.dot(wpo[:, lo:hi], out_h.astype(bf16),
                              preferred_element_type=f32)

    x1 = x + proj                                           # attention residual

    # -------- LayerNorm2 + GDFN-as-written (project_in -> gelu gate) --------
    mu2 = jnp.mean(x1, axis=0, keepdims=True)
    var2 = jnp.mean((x1 - mu2) ** 2, axis=0, keepdims=True)
    y2 = (x1 - mu2) * lax.rsqrt(var2 + LN_EPS) * g2_ref[...] + b2_ref[...]
    z = jnp.dot(wpi_ref[...], y2.astype(bf16), preferred_element_type=f32)
    gelu = 0.5 * z * (1.0 + lax.erf(z * (2.0 ** -0.5)))     # exact-erf gelu
    o_ref[0] = (x1 + gelu * z).astype(o_ref.dtype)          # ffn residual


# ------------------------------ wrapper glue --------------------------------

def transformer_block_pallas(x_nchw, params):
    B, C, H, W = x_nchw.shape
    HW = H * W
    heads = params['num_heads']
    C3 = 3 * C
    assert C % heads == 0

    # NCHW -> (B, C, HW): channels on sublanes, flattened spatial on lanes.
    # Pure reshape: no transpose / pad round trips through HBM.
    x = x_nchw.reshape(B, C, HW).astype(jnp.float32)

    # Row-boundary masks for the flat-layout depthwise conv.
    col = jnp.arange(HW, dtype=jnp.int32) % W
    masks = jnp.stack([(col != 0).astype(jnp.float32),
                       (col != W - 1).astype(jnp.float32)], axis=0)  # (2, HW)

    # Flat zero-pad length (>= W+1, rounded up to a 128-lane boundary so the
    # interior scratch store is lane-aligned).
    lpad = ((W + 1 + 127) // 128) * 128
    padded = HW + 2 * lpad

    bf16 = jnp.bfloat16
    kernel = functools.partial(_fused_block_kernel,
                               heads=heads, H=H, W=W, lpad=lpad)

    def batch_spec(shape):
        return pl.BlockSpec((1,) + tuple(shape), lambda b: (b, 0, 0))

    def shared_spec(shape):
        n = len(shape)
        return pl.BlockSpec(tuple(shape), lambda b, n=n: (0,) * n)

    out = pl.pallas_call(
        kernel,
        out_shape=jax.ShapeDtypeStruct((B, C, HW), jnp.float32),
        grid=(B,),
        in_specs=[
            batch_spec((C, HW)),                 # x
            shared_spec((2, HW)),                # conv boundary masks
            shared_spec((C, 1)),                 # ln1 gamma
            shared_spec((C, 1)),                 # ln1 beta
            shared_spec((C3, C)),                # qkv 1x1 weight (bf16)
            shared_spec((C3, 9)),                # depthwise 3x3 taps
            shared_spec((heads, 1)),             # temperature
            shared_spec((C, C)),                 # project_out weight (bf16)
            shared_spec((C, 1)),                 # ln2 gamma
            shared_spec((C, 1)),                 # ln2 beta
            shared_spec((C, C)),                 # project_in weight (bf16)
        ],
        out_specs=batch_spec((C, HW)),
        scratch_shapes=[pltpu.VMEM((C3, padded), jnp.float32)],
        compiler_params=pltpu.CompilerParams(
            dimension_semantics=("parallel",),
            vmem_limit_bytes=32 * 1024 * 1024,
        ),
    )(x, masks,
      params['ln1_g'], params['ln1_b'],
      params['w_qkv'].astype(bf16), params['w_dw'],
      params['temperature'], params['w_po'].astype(bf16),
      params['ln2_g'], params['ln2_b'], params['w_pi'].astype(bf16))

    return out.reshape(B, C, H, W)


# --------------------------- pure-JAX reference -----------------------------

def transformer_block_ref(x_nchw, params):
    B, C, H, W = x_nchw.shape
    HW = H * W
    heads = params['num_heads']
    ch = C // heads
    HI = lax.Precision.HIGHEST
    x = x_nchw.reshape(B, C, HW).astype(jnp.float32)

    def ln(t, g, b):
        mu = jnp.mean(t, axis=1, keepdims=True)
        var = jnp.mean((t - mu) ** 2, axis=1, keepdims=True)
        return (t - mu) * lax.rsqrt(var + LN_EPS) * g[None] + b[None]

    y = ln(x, params['ln1_g'], params['ln1_b'])
    qkv = jnp.einsum('oc,bcp->bop', params['w_qkv'], y, precision=HI)
    sp = qkv.reshape(B, 3 * C, H, W)
    spp = jnp.pad(sp, ((0, 0), (0, 0), (1, 1), (1, 1)))
    acc = jnp.zeros_like(sp)
    for di in range(3):
        for dj in range(3):
            acc = acc + (spp[:, :, di:di + H, dj:dj + W]
                         * params['w_dw'][None, :, di * 3 + dj, None, None])
    qkv_dw = acc.reshape(B, 3 * C, HW)

    def to_heads(t):
        return t.reshape(B, heads, ch, HW)

    q = to_heads(qkv_dw[:, :C])
    k = to_heads(qkv_dw[:, C:2 * C])
    v = to_heads(qkv_dw[:, 2 * C:])
    qn = q / jnp.maximum(jnp.linalg.norm(q, axis=-1, keepdims=True), NORM_EPS)
    kn = k / jnp.maximum(jnp.linalg.norm(k, axis=-1, keepdims=True), NORM_EPS)
    t = params['temperature'].reshape(1, heads, 1, 1)
    s = jnp.einsum('bhcp,bhdp->bhcd', qn, kn, precision=HI) * t
    attn = jax.nn.softmax(s, axis=-1)
    out = jnp.einsum('bhcd,bhdp->bhcp', attn, v, precision=HI).reshape(B, C, HW)
    x1 = x + jnp.einsum('oc,bcp->bop', params['w_po'], out, precision=HI)

    y2 = ln(x1, params['ln2_g'], params['ln2_b'])
    z = jnp.einsum('oc,bcp->bop', params['w_pi'], y2, precision=HI)
    gelu = 0.5 * z * (1.0 + lax.erf(z * (2.0 ** -0.5)))
    return (x1 + gelu * z).reshape(B, C, H, W)


# ------------------------------ param init ----------------------------------

def init_params(key, C, num_heads, expansion_factor):
    hidden = int(C * expansion_factor)
    # The reference forward's `x + ffn(...)` only works when hidden == C.
    assert hidden == C, "GDFN-as-written residual requires expansion_factor*C == C"
    ks = jax.random.split(key, 8)
    s = 0.1
    return dict(
        num_heads=num_heads,
        ln1_g=1.0 + 0.1 * jax.random.normal(ks[0], (C, 1), jnp.float32),
        ln1_b=0.1 * jax.random.normal(ks[1], (C, 1), jnp.float32),
        ln2_g=1.0 + 0.1 * jax.random.normal(ks[2], (C, 1), jnp.float32),
        ln2_b=0.1 * jax.random.normal(ks[3], (C, 1), jnp.float32),
        temperature=jnp.ones((num_heads, 1), jnp.float32),          # torch init: ones
        w_qkv=jax.random.normal(ks[4], (3 * C, C), jnp.float32) * s,   # (out, in)
        w_dw=jax.random.normal(ks[5], (3 * C, 9), jnp.float32) * s,    # (chan, tap)
        w_po=jax.random.normal(ks[6], (C, C), jnp.float32) * s,
        w_pi=jax.random.normal(ks[7], (hidden, C), jnp.float32) * s,
    )


if __name__ == "__main__":
    key = jax.random.PRNGKey(0)
    kx, kp = jax.random.split(key)

    B, C, H, W = 2, 8, 16, 16
    num_heads, expansion_factor = 2, 1.0

    x = jax.random.normal(kx, (B, C, H, W), jnp.float32)
    params = init_params(kp, C, num_heads, expansion_factor)

    out = jax.block_until_ready(transformer_block_pallas(x, params))
    ref = transformer_block_ref(x, params)

    assert out.shape == (B, C, H, W)
    max_err = float(jnp.max(jnp.abs(out - ref)))
    # bf16-operand / f32-accumulate MXU path: tolerance re-baselined vs f32 ref.
    assert jnp.allclose(out, ref, atol=3e-2, rtol=3e-2), f"max abs err = {max_err}"
    print("KERNEL_OK")
</pallas_src>

<mosaic_0001>
module attributes {stable_mosaic.version = 11 : i64} {
  func.func @_fused_block_kernel(%arg0: i32, %arg1: memref<1x8x256xf32, #tpu.memory_space<vmem>>, %arg2: memref<2x256xf32, #tpu.memory_space<vmem>>, %arg3: memref<8x1xf32, #tpu.memory_space<vmem>>, %arg4: memref<8x1xf32, #tpu.memory_space<vmem>>, %arg5: memref<24x8xbf16, #tpu.memory_space<vmem>>, %arg6: memref<24x9xf32, #tpu.memory_space<vmem>>, %arg7: memref<2x1xf32, #tpu.memory_space<vmem>>, %arg8: memref<8x8xbf16, #tpu.memory_space<vmem>>, %arg9: memref<8x1xf32, #tpu.memory_space<vmem>>, %arg10: memref<8x1xf32, #tpu.memory_space<vmem>>, %arg11: memref<8x8xbf16, #tpu.memory_space<vmem>>, %arg12: memref<1x8x256xf32, #tpu.memory_space<vmem>>, %arg13: memref<24x512xf32, #tpu.memory_space<vmem>>) attributes {dimension_semantics = [#tpu.dimension_semantics<parallel>], iteration_bounds = array<i64: 2>, scalar_prefetch = 0 : i64, scratch_operands = 1 : i64, tpu.core_type = #tpu.core_type<tc>, window_params = [{transform_indices = @transform_0, window_bounds = array<i64: 1, 8, 256>}, {pipeline_mode = #tpu.pipeline_mode<synchronous>, transform_indices = @transform_1, window_bounds = array<i64: 2, 256>}, {pipeline_mode = #tpu.pipeline_mode<synchronous>, transform_indices = @transform_2, window_bounds = array<i64: 8, 1>}, {pipeline_mode = #tpu.pipeline_mode<synchronous>, transform_indices = @transform_3, window_bounds = array<i64: 8, 1>}, {pipeline_mode = #tpu.pipeline_mode<synchronous>, transform_indices = @transform_4, window_bounds = array<i64: 24, 8>}, {pipeline_mode = #tpu.pipeline_mode<synchronous>, transform_indices = @transform_5, window_bounds = array<i64: 24, 9>}, {pipeline_mode = #tpu.pipeline_mode<synchronous>, transform_indices = @transform_6, window_bounds = array<i64: 2, 1>}, {pipeline_mode = #tpu.pipeline_mode<synchronous>, transform_indices = @transform_7, window_bounds = array<i64: 8, 8>}, {pipeline_mode = #tpu.pipeline_mode<synchronous>, transform_indices = @transform_8, window_bounds = array<i64: 8, 1>}, {pipeline_mode = #tpu.pipeline_mode<synchronous>, transform_indices = @transform_9, window_bounds = array<i64: 8, 1>}, {pipeline_mode = #tpu.pipeline_mode<synchronous>, transform_indices = @transform_10, window_bounds = array<i64: 8, 8>}, {transform_indices = @transform_11, window_bounds = array<i64: 1, 8, 256>}]} {
    %c0 = arith.constant 0 : index
    %c0_0 = arith.constant 0 : index
    %c0_1 = arith.constant 0 : index
    %0 = vector.load %arg1[%c0, %c0_0, %c0_1] : memref<1x8x256xf32, #tpu.memory_space<vmem>>, vector<1x8x256xf32>
    %1 = vector.shape_cast %0 : vector<1x8x256xf32> to vector<8x256xf32>
    %cst = arith.constant dense<0.000000e+00> : vector<256xf32>
    %2 = vector.multi_reduction <add>, %1, %cst [0] : vector<8x256xf32> to vector<256xf32>
    %3 = vector.shape_cast %2 : vector<256xf32> to vector<1x256xf32>
    %cst_2 = arith.constant 8.000000e+00 : f32
    %4 = vector.broadcast %cst_2 : f32 to vector<1x256xf32>
    %5 = arith.divf %3, %4 : vector<1x256xf32>
    %6 = vector.broadcast %5 : vector<1x256xf32> to vector<8x256xf32>
    %7 = arith.subf %1, %6 : vector<8x256xf32>
    %8 = arith.mulf %7, %7 : vector<8x256xf32>
    %cst_3 = arith.constant dense<0.000000e+00> : vector<256xf32>
    %9 = vector.multi_reduction <add>, %8, %cst_3 [0] : vector<8x256xf32> to vector<256xf32>
    %10 = vector.shape_cast %9 : vector<256xf32> to vector<1x256xf32>
    %cst_4 = arith.constant 8.000000e+00 : f32
    %11 = vector.broadcast %cst_4 : f32 to vector<1x256xf32>
    %12 = arith.divf %10, %11 : vector<1x256xf32>
    %13 = vector.broadcast %5 : vector<1x256xf32> to vector<8x256xf32>
    %14 = arith.subf %1, %13 : vector<8x256xf32>
    %cst_5 = arith.constant 9.99999974E-6 : f32
    %15 = vector.broadcast %cst_5 : f32 to vector<1x256xf32>
    %16 = arith.addf %12, %15 : vector<1x256xf32>
    %17 = math.rsqrt %16 : vector<1x256xf32>
    %18 = vector.broadcast %17 : vector<1x256xf32> to vector<8x256xf32>
    %19 = arith.mulf %14, %18 : vector<8x256xf32>
    %c0_6 = arith.constant 0 : index
    %c0_7 = arith.constant 0 : index
    %20 = vector.load %arg3[%c0_6, %c0_7] : memref<8x1xf32, #tpu.memory_space<vmem>>, vector<8x1xf32>
    %21 = vector.broadcast %20 : vector<8x1xf32> to vector<8x256xf32>
    %22 = arith.mulf %19, %21 : vector<8x256xf32>
    %c0_8 = arith.constant 0 : index
    %c0_9 = arith.constant 0 : index
    %23 = vector.load %arg4[%c0_8, %c0_9] : memref<8x1xf32, #tpu.memory_space<vmem>>, vector<8x1xf32>
    %24 = vector.broadcast %23 : vector<8x1xf32> to vector<8x256xf32>
    %25 = arith.addf %22, %24 : vector<8x256xf32>
    %c0_10 = arith.constant 0 : index
    %c0_11 = arith.constant 0 : index
    %26 = vector.load %arg5[%c0_10, %c0_11] : memref<24x8xbf16, #tpu.memory_space<vmem>>, vector<24x8xbf16>
    %27 = arith.truncf %25 : vector<8x256xf32> to vector<8x256xbf16>
    %cst_12 = arith.constant dense<0.000000e+00> : vector<24x256xf32>
    %28 = tpu.matmul %26, %27, %cst_12 {dimension_numbers = #tpu.dot_dimension_numbers<[1], [0], [0], [1], [0, 0, 1, 1], [], []>} : vector<24x8xbf16>, vector<8x256xbf16>, vector<24x256xf32> -> vector<24x256xf32>
    %cst_13 = arith.constant 0.000000e+00 : f32
    %29 = vector.broadcast %cst_13 : f32 to vector<24x512xf32>
    %c0_14 = arith.constant 0 : index
    %c0_15 = arith.constant 0 : index
    %30 = vector.load %arg13[%c0_14, %c0_15] : memref<24x512xf32, #tpu.memory_space<vmem>>, vector<24x512xf32>
    tpu.vector_store %arg13[%c0_14, %c0_15], %29 {strides = array<i32>} : memref<24x512xf32, #tpu.memory_space<vmem>>, vector<24x512xf32>,
    %c0_16 = arith.constant 0 : index
    %c128 = arith.constant 128 : index
    %31 = vector.load %arg13[%c0_16, %c128] : memref<24x512xf32, #tpu.memory_space<vmem>>, vector<24x256xf32>
    tpu.vector_store %arg13[%c0_16, %c128], %28 {strides = array<i32>} : memref<24x512xf32, #tpu.memory_space<vmem>>, vector<24x256xf32>,
    %c0_17 = arith.constant 0 : index
    %c0_18 = arith.constant 0 : index
    %32 = vector.load %arg6[%c0_17, %c0_18] : memref<24x9xf32, #tpu.memory_space<vmem>>, vector<24x9xf32>
    %c0_19 = arith.constant 0 : index
    %c0_20 = arith.constant 0 : index
    %33 = vector.load %arg2[%c0_19, %c0_20] : memref<2x256xf32, #tpu.memory_space<vmem>>, vector<1x256xf32>
    %c1 = arith.constant 1 : index
    %c0_21 = arith.constant 0 : index
    %34 = vector.load %arg2[%c1, %c0_21] : memref<2x256xf32, #tpu.memory_space<vmem>>, vector<1x256xf32>
    %cst_22 = arith.constant 0.000000e+00 : f32
    %35 = vector.broadcast %cst_22 : f32 to vector<24x256xf32>
    %c0_23 = arith.constant 0 : index
    %c111 = arith.constant 111 : index
    %36 = vector.load %arg13[%c0_23, %c111] : memref<24x512xf32, #tpu.memory_space<vmem>>, vector<24x256xf32>
    %37 = vector.extract_strided_slice %32 {offsets = [0, 0], sizes = [24, 1], strides = [1, 1]} : vector<24x9xf32> to vector<24x1xf32>
    %38 = vector.broadcast %37 : vector<24x1xf32> to vector<24x256xf32>
    %39 = arith.mulf %36, %38 : vector<24x256xf32>
    %40 = vector.broadcast %33 : vector<1x256xf32> to vector<24x256xf32>
    %41 = arith.mulf %39, %40 : vector<24x256xf32>
    %42 = arith.addf %35, %41 : vector<24x256xf32>
    %c0_24 = arith.constant 0 : index
    %c112 = arith.constant 112 : index
    %43 = vector.load %arg13[%c0_24, %c112] : memref<24x512xf32, #tpu.memory_space<vmem>>, vector<24x256xf32>
    %44 = vector.extract_strided_slice %32 {offsets = [0, 1], sizes = [24, 1], strides = [1, 1]} : vector<24x9xf32> to vector<24x1xf32>
    %45 = vector.broadcast %44 : vector<24x1xf32> to vector<24x256xf32>
    %46 = arith.mulf %43, %45 : vector<24x256xf32>
    %47 = arith.addf %42, %46 : vector<24x256xf32>
    %c0_25 = arith.constant 0 : index
    %c113 = arith.constant 113 : index
    %48 = vector.load %arg13[%c0_25, %c113] : memref<24x512xf32, #tpu.memory_space<vmem>>, vector<24x256xf32>
    %49 = vector.extract_strided_slice %32 {offsets = [0, 2], sizes = [24, 1], strides = [1, 1]} : vector<24x9xf32> to vector<24x1xf32>
    %50 = vector.broadcast %49 : vector<24x1xf32> to vector<24x256xf32>
    %51 = arith.mulf %48, %50 : vector<24x256xf32>
    %52 = vector.broadcast %34 : vector<1x256xf32> to vector<24x256xf32>
    %53 = arith.mulf %51, %52 : vector<24x256xf32>
    %54 = arith.addf %47, %53 : vector<24x256xf32>
    %c0_26 = arith.constant 0 : index
    %c127 = arith.constant 127 : index
    %55 = vector.load %arg13[%c0_26, %c127] : memref<24x512xf32, #tpu.memory_space<vmem>>, vector<24x256xf32>
    %56 = vector.extract_strided_slice %32 {offsets = [0, 3], sizes = [24, 1], strides = [1, 1]} : vector<24x9xf32> to vector<24x1xf32>
    %57 = vector.broadcast %56 : vector<24x1xf32> to vector<24x256xf32>
    %58 = arith.mulf %55, %57 : vector<24x256xf32>
    %59 = vector.broadcast %33 : vector<1x256xf32> to vector<24x256xf32>
    %60 = arith.mulf %58, %59 : vector<24x256xf32>
    %61 = arith.addf %54, %60 : vector<24x256xf32>
    %c0_27 = arith.constant 0 : index
    %c128_28 = arith.constant 128 : index
    %62 = vector.load %arg13[%c0_27, %c128_28] : memref<24x512xf32, #tpu.memory_space<vmem>>, vector<24x256xf32>
    %63 = vector.extract_strided_slice %32 {offsets = [0, 4], sizes = [24, 1], strides = [1, 1]} : vector<24x9xf32> to vector<24x1xf32>
    %64 = vector.broadcast %63 : vector<24x1xf32> to vector<24x256xf32>
    %65 = arith.mulf %62, %64 : vector<24x256xf32>
    %66 = arith.addf %61, %65 : vector<24x256xf32>
    %c0_29 = arith.constant 0 : index
    %c129 = arith.constant 129 : index
    %67 = vector.load %arg13[%c0_29, %c129] : memref<24x512xf32, #tpu.memory_space<vmem>>, vector<24x256xf32>
    %68 = vector.extract_strided_slice %32 {offsets = [0, 5], sizes = [24, 1], strides = [1, 1]} : vector<24x9xf32> to vector<24x1xf32>
    %69 = vector.broadcast %68 : vector<24x1xf32> to vector<24x256xf32>
    %70 = arith.mulf %67, %69 : vector<24x256xf32>
    %71 = vector.broadcast %34 : vector<1x256xf32> to vector<24x256xf32>
    %72 = arith.mulf %70, %71 : vector<24x256xf32>
    %73 = arith.addf %66, %72 : vector<24x256xf32>
    %c0_30 = arith.constant 0 : index
    %c143 = arith.constant 143 : index
    %74 = vector.load %arg13[%c0_30, %c143] : memref<24x512xf32, #tpu.memory_space<vmem>>, vector<24x256xf32>
    %75 = vector.extract_strided_slice %32 {offsets = [0, 6], sizes = [24, 1], strides = [1, 1]} : vector<24x9xf32> to vector<24x1xf32>
    %76 = vector.broadcast %75 : vector<24x1xf32> to vector<24x256xf32>
    %77 = arith.mulf %74, %76 : vector<24x256xf32>
    %78 = vector.broadcast %33 : vector<1x256xf32> to vector<24x256xf32>
    %79 = arith.mulf %77, %78 : vector<24x256xf32>
    %80 = arith.addf %73, %79 : vector<24x256xf32>
    %c0_31 = arith.constant 0 : index
    %c144 = arith.constant 144 : index
    %81 = vector.load %arg13[%c0_31, %c144] : memref<24x512xf32, #tpu.memory_space<vmem>>, vector<24x256xf32>
    %82 = vector.extract_strided_slice %32 {offsets = [0, 7], sizes = [24, 1], strides = [1, 1]} : vector<24x9xf32> to vector<24x1xf32>
    %83 = vector.broadcast %82 : vector<24x1xf32> to vector<24x256xf32>
    %84 = arith.mulf %81, %83 : vector<24x256xf32>
    %85 = arith.addf %80, %84 : vector<24x256xf32>
    %c0_32 = arith.constant 0 : index
    %c145 = arith.constant 145 : index
    %86 = vector.load %arg13[%c0_32, %c145] : memref<24x512xf32, #tpu.memory_space<vmem>>, vector<24x256xf32>
    %87 = vector.extract_strided_slice %32 {offsets = [0, 8], sizes = [24, 1], strides = [1, 1]} : vector<24x9xf32> to vector<24x1xf32>
    %88 = vector.broadcast %87 : vector<24x1xf32> to vector<24x256xf32>
    %89 = arith.mulf %86, %88 : vector<24x256xf32>
    %90 = vector.broadcast %34 : vector<1x256xf32> to vector<24x256xf32>
    %91 = arith.mulf %89, %90 : vector<24x256xf32>
    %92 = arith.addf %85, %91 : vector<24x256xf32>
    %93 = vector.extract_strided_slice %92 {offsets = [0, 0], sizes = [8, 256], strides = [1, 1]} : vector<24x256xf32> to vector<8x256xf32>
    %94 = vector.extract_strided_slice %92 {offsets = [8, 0], sizes = [8, 256], strides = [1, 1]} : vector<24x256xf32> to vector<8x256xf32>
    %95 = vector.extract_strided_slice %92 {offsets = [16, 0], sizes = [8, 256], strides = [1, 1]} : vector<24x256xf32> to vector<8x256xf32>
    %96 = arith.mulf %93, %93 : vector<8x256xf32>
    %cst_33 = arith.constant dense<0.000000e+00> : vector<8xf32>
    %97 = vector.multi_reduction <add>, %96, %cst_33 [1] : vector<8x256xf32> to vector<8xf32>
    %98 = vector.shape_cast %97 : vector<8xf32> to vector<8x1xf32>
    %99 = math.sqrt %98 : vector<8x1xf32>
    %cst_34 = arith.constant 9.99999996E-13 : f32
    %100 = vector.broadcast %cst_34 : f32 to vector<8x1xf32>
    %101 = arith.maximumf %99, %100 : vector<8x1xf32>
    %102 = vector.broadcast %101 : vector<8x1xf32> to vector<8x256xf32>
    %103 = arith.divf %93, %102 : vector<8x256xf32>
    %104 = arith.mulf %94, %94 : vector<8x256xf32>
    %cst_35 = arith.constant dense<0.000000e+00> : vector<8xf32>
    %105 = vector.multi_reduction <add>, %104, %cst_35 [1] : vector<8x256xf32> to vector<8xf32>
    %106 = vector.shape_cast %105 : vector<8xf32> to vector<8x1xf32>
    %107 = math.sqrt %106 : vector<8x1xf32>
    %cst_36 = arith.constant 9.99999996E-13 : f32
    %108 = vector.broadcast %cst_36 : f32 to vector<8x1xf32>
    %109 = arith.maximumf %107, %108 : vector<8x1xf32>
    %110 = vector.broadcast %109 : vector<8x1xf32> to vector<8x256xf32>
    %111 = arith.divf %94, %110 : vector<8x256xf32>
    %c0_37 = arith.constant 0 : index
    %c0_38 = arith.constant 0 : index
    %112 = vector.load %arg7[%c0_37, %c0_38] : memref<2x1xf32, #tpu.memory_space<vmem>>, vector<2x1xf32>
    %c0_39 = arith.constant 0 : index
    %c0_40 = arith.constant 0 : index
    %113 = vector.load %arg8[%c0_39, %c0_40] : memref<8x8xbf16, #tpu.memory_space<vmem>>, vector<8x8xbf16>
    %cst_41 = arith.constant 0.000000e+00 : f32
    %114 = vector.broadcast %cst_41 : f32 to vector<8x256xf32>
    %115 = vector.extract_strided_slice %103 {offsets = [0, 0], sizes = [4, 256], strides = [1, 1]} : vector<8x256xf32> to vector<4x256xf32>
    %116 = arith.truncf %115 : vector<4x256xf32> to vector<4x256xbf16>
    %117 = vector.extract_strided_slice %111 {offsets = [0, 0], sizes = [4, 256], strides = [1, 1]} : vector<8x256xf32> to vector<4x256xf32>
    %118 = arith.truncf %117 : vector<4x256xf32> to vector<4x256xbf16>
    %119 = vector.extract_strided_slice %95 {offsets = [0, 0], sizes = [4, 256], strides = [1, 1]} : vector<8x256xf32> to vector<4x256xf32>
    %120 = arith.truncf %119 : vector<4x256xf32> to vector<4x256xbf16>
    "tpu.trace_start"() <{level = 10 : i32, message = "cp,dp->cd"}> : () -> ()
    %cst_42 = arith.constant dense<0.000000e+00> : vector<4x4xf32>
    %121 = tpu.matmul %116, %118, %cst_42 {dimension_numbers = #tpu.dot_dimension_numbers<[1], [1], [0], [0], [0, 0, 1, 0], [], []>} : vector<4x256xbf16>, vector<4x256xbf16>, vector<4x4xf32> -> vector<4x4xf32>
    "tpu.trace_stop"() : () -> ()
    %122 = vector.extract_strided_slice %112 {offsets = [0, 0], sizes = [1, 1], strides = [1, 1]} : vector<2x1xf32> to vector<1x1xf32>
    %123 = vector.broadcast %122 : vector<1x1xf32> to vector<4x4xf32>
    %124 = arith.mulf %121, %123 : vector<4x4xf32>
    %cst_43 = arith.constant dense<0xFF800000> : vector<4xf32>
    %125 = vector.multi_reduction <maximumf>, %124, %cst_43 [1] : vector<4x4xf32> to vector<4xf32>
    %126 = vector.shape_cast %125 : vector<4xf32> to vector<4x1xf32>
    %127 = vector.broadcast %126 : vector<4x1xf32> to vector<4x4xf32>
    %128 = arith.subf %124, %127 : vector<4x4xf32>
    %129 = math.exp %128 : vector<4x4xf32>
    %cst_44 = arith.constant dense<0.000000e+00> : vector<4xf32>
    %130 = vector.multi_reduction <add>, %129, %cst_44 [1] : vector<4x4xf32> to vector<4xf32>
    %131 = vector.shape_cast %130 : vector<4xf32> to vector<4x1xf32>
    %132 = tpu.reciprocal %131 {approx = true} : vector<4x1xf32> -> vector<4x1xf32>
    %133 = vector.broadcast %132 : vector<4x1xf32> to vector<4x4xf32>
    %134 = arith.mulf %129, %133 : vector<4x4xf32>
    %135 = arith.truncf %134 : vector<4x4xf32> to vector<4x4xbf16>
    %cst_45 = arith.constant dense<0.000000e+00> : vector<4x256xf32>
    %136 = tpu.matmul %135, %120, %cst_45 {dimension_numbers = #tpu.dot_dimension_numbers<[1], [0], [0], [1], [0, 0, 1, 1], [], []>} : vector<4x4xbf16>, vector<4x256xbf16>, vector<4x256xf32> -> vector<4x256xf32>
    %137 = vector.extract_strided_slice %113 {offsets = [0, 0], sizes = [8, 4], strides = [1, 1]} : vector<8x8xbf16> to vector<8x4xbf16>
    %138 = arith.truncf %136 : vector<4x256xf32> to vector<4x256xbf16>
    %cst_46 = arith.constant dense<0.000000e+00> : vector<8x256xf32>
    %139 = tpu.matmul %137, %138, %cst_46 {dimension_numbers = #tpu.dot_dimension_numbers<[1], [0], [0], [1], [0, 0, 1, 1], [], []>} : vector<8x4xbf16>, vector<4x256xbf16>, vector<8x256xf32> -> vector<8x256xf32>
    %140 = arith.addf %114, %139 : vector<8x256xf32>
    %141 = vector.extract_strided_slice %103 {offsets = [4, 0], sizes = [4, 256], strides = [1, 1]} : vector<8x256xf32> to vector<4x256xf32>
    %142 = arith.truncf %141 : vector<4x256xf32> to vector<4x256xbf16>
    %143 = vector.extract_strided_slice %111 {offsets = [4, 0], sizes = [4, 256], strides = [1, 1]} : vector<8x256xf32> to vector<4x256xf32>
    %144 = arith.truncf %143 : vector<4x256xf32> to vector<4x256xbf16>
    %145 = vector.extract_strided_slice %95 {offsets = [4, 0], sizes = [4, 256], strides = [1, 1]} : vector<8x256xf32> to vector<4x256xf32>
    %146 = arith.truncf %145 : vector<4x256xf32> to vector<4x256xbf16>
    "tpu.trace_start"() <{level = 10 : i32, message = "cp,dp->cd"}> : () -> ()
    %cst_47 = arith.constant dense<0.000000e+00> : vector<4x4xf32>
    %147 = tpu.matmul %142, %144, %cst_47 {dimension_numbers = #tpu.dot_dimension_numbers<[1], [1], [0], [0], [0, 0, 1, 0], [], []>} : vector<4x256xbf16>, vector<4x256xbf16>, vector<4x4xf32> -> vector<4x4xf32>
    "tpu.trace_stop"() : () -> ()
    %148 = vector.extract_strided_slice %112 {offsets = [1, 0], sizes = [1, 1], strides = [1, 1]} : vector<2x1xf32> to vector<1x1xf32>
    %149 = vector.broadcast %148 : vector<1x1xf32> to vector<4x4xf32>
    %150 = arith.mulf %147, %149 : vector<4x4xf32>
    %cst_48 = arith.constant dense<0xFF800000> : vector<4xf32>
    %151 = vector.multi_reduction <maximumf>, %150, %cst_48 [1] : vector<4x4xf32> to vector<4xf32>
    %152 = vector.shape_cast %151 : vector<4xf32> to vector<4x1xf32>
    %153 = vector.broadcast %152 : vector<4x1xf32> to vector<4x4xf32>
    %154 = arith.subf %150, %153 : vector<4x4xf32>
    %155 = math.exp %154 : vector<4x4xf32>
    %cst_49 = arith.constant dense<0.000000e+00> : vector<4xf32>
    %156 = vector.multi_reduction <add>, %155, %cst_49 [1] : vector<4x4xf32> to vector<4xf32>
    %157 = vector.shape_cast %156 : vector<4xf32> to vector<4x1xf32>
    %158 = tpu.reciprocal %157 {approx = true} : vector<4x1xf32> -> vector<4x1xf32>
    %159 = vector.broadcast %158 : vector<4x1xf32> to vector<4x4xf32>
    %160 = arith.mulf %155, %159 : vector<4x4xf32>
    %161 = arith.truncf %160 : vector<4x4xf32> to vector<4x4xbf16>
    %cst_50 = arith.constant dense<0.000000e+00> : vector<4x256xf32>
    %162 = tpu.matmul %161, %146, %cst_50 {dimension_numbers = #tpu.dot_dimension_numbers<[1], [0], [0], [1], [0, 0, 1, 1], [], []>} : vector<4x4xbf16>, vector<4x256xbf16>, vector<4x256xf32> -> vector<4x256xf32>
    %163 = vector.extract_strided_slice %113 {offsets = [0, 4], sizes = [8, 4], strides = [1, 1]} : vector<8x8xbf16> to vector<8x4xbf16>
    %164 = arith.truncf %162 : vector<4x256xf32> to vector<4x256xbf16>
    %cst_51 = arith.constant dense<0.000000e+00> : vector<8x256xf32>
    %165 = tpu.matmul %163, %164, %cst_51 {dimension_numbers = #tpu.dot_dimension_numbers<[1], [0], [0], [1], [0, 0, 1, 1], [], []>} : vector<8x4xbf16>, vector<4x256xbf16>, vector<8x256xf32> -> vector<8x256xf32>
    %166 = arith.addf %140, %165 : vector<8x256xf32>
    %167 = arith.addf %1, %166 : vector<8x256xf32>
    %cst_52 = arith.constant dense<0.000000e+00> : vector<256xf32>
    %168 = vector.multi_reduction <add>, %167, %cst_52 [0] : vector<8x256xf32> to vector<256xf32>
    %169 = vector.shape_cast %168 : vector<256xf32> to vector<1x256xf32>
    %cst_53 = arith.constant 8.000000e+00 : f32
    %170 = vector.broadcast %cst_53 : f32 to vector<1x256xf32>
    %171 = arith.divf %169, %170 : vector<1x256xf32>
    %172 = vector.broadcast %171 : vector<1x256xf32> to vector<8x256xf32>
    %173 = arith.subf %167, %172 : vector<8x256xf32>
    %174 = arith.mulf %173, %173 : vector<8x256xf32>
    %cst_54 = arith.constant dense<0.000000e+00> : vector<256xf32>
    %175 = vector.multi_reduction <add>, %174, %cst_54 [0] : vector<8x256xf32> to vector<256xf32>
    %176 = vector.shape_cast %175 : vector<256xf32> to vector<1x256xf32>
    %cst_55 = arith.constant 8.000000e+00 : f32
    %177 = vector.broadcast %cst_55 : f32 to vector<1x256xf32>
    %178 = arith.divf %176, %177 : vector<1x256xf32>
    %179 = vector.broadcast %171 : vector<1x256xf32> to vector<8x256xf32>
    %180 = arith.subf %167, %179 : vector<8x256xf32>
    %cst_56 = arith.constant 9.99999974E-6 : f32
    %181 = vector.broadcast %cst_56 : f32 to vector<1x256xf32>
    %182 = arith.addf %178, %181 : vector<1x256xf32>
    %183 = math.rsqrt %182 : vector<1x256xf32>
    %184 = vector.broadcast %183 : vector<1x256xf32> to vector<8x256xf32>
    %185 = arith.mulf %180, %184 : vector<8x256xf32>
    %c0_57 = arith.constant 0 : index
    %c0_58 = arith.constant 0 : index
    %186 = vector.load %arg9[%c0_57, %c0_58] : memref<8x1xf32, #tpu.memory_space<vmem>>, vector<8x1xf32>
    %187 = vector.broadcast %186 : vector<8x1xf32> to vector<8x256xf32>
    %188 = arith.mulf %185, %187 : vector<8x256xf32>
    %c0_59 = arith.constant 0 : index
    %c0_60 = arith.constant 0 : index
    %189 = vector.load %arg10[%c0_59, %c0_60] : memref<8x1xf32, #tpu.memory_space<vmem>>, vector<8x1xf32>
    %190 = vector.broadcast %189 : vector<8x1xf32> to vector<8x256xf32>
    %191 = arith.addf %188, %190 : vector<8x256xf32>
    %c0_61 = arith.constant 0 : index
    %c0_62 = arith.constant 0 : index
    %192 = vector.load %arg11[%c0_61, %c0_62] : memref<8x8xbf16, #tpu.memory_space<vmem>>, vector<8x8xbf16>
    %193 = arith.truncf %191 : vector<8x256xf32> to vector<8x256xbf16>
    %cst_63 = arith.constant dense<0.000000e+00> : vector<8x256xf32>
    %194 = tpu.matmul %192, %193, %cst_63 {dimension_numbers = #tpu.dot_dimension_numbers<[1], [0], [0], [1], [0, 0, 1, 1], [], []>} : vector<8x8xbf16>, vector<8x256xbf16>, vector<8x256xf32> -> vector<8x256xf32>
    %cst_64 = arith.constant 5.000000e-01 : f32
    %195 = vector.broadcast %cst_64 : f32 to vector<8x256xf32>
    %196 = arith.mulf %195, %194 : vector<8x256xf32>
    %cst_65 = arith.constant 0.707106769 : f32
    %197 = vector.broadcast %cst_65 : f32 to vector<8x256xf32>
    %198 = arith.mulf %194, %197 : vector<8x256xf32>
    %199 = math.erf %198 : vector<8x256xf32>
    %cst_66 = arith.constant 1.000000e+00 : f32
    %200 = vector.broadcast %cst_66 : f32 to vector<8x256xf32>
    %201 = arith.addf %200, %199 : vector<8x256xf32>
    %202 = arith.mulf %196, %201 : vector<8x256xf32>
    %203 = arith.mulf %202, %194 : vector<8x256xf32>
    %204 = arith.addf %167, %203 : vector<8x256xf32>
    %c0_67 = arith.constant 0 : index
    %c0_68 = arith.constant 0 : index
    %c0_69 = arith.constant 0 : index
    %205 = vector.load %arg12[%c0_67, %c0_68, %c0_69] : memref<1x8x256xf32, #tpu.memory_space<vmem>>, vector<1x8x256xf32>
    %206 = vector.shape_cast %205 : vector<1x8x256xf32> to vector<8x256xf32>
    %207 = vector.shape_cast %204 : vector<8x256xf32> to vector<1x8x256xf32>
    tpu.vector_store %arg12[%c0_67, %c0_68, %c0_69], %207 {strides = array<i32>} : memref<1x8x256xf32, #tpu.memory_space<vmem>>, vector<1x8x256xf32>,
    return
  }
  func.func @transform_0(%arg0: i32) -> (i32, i32, i32) {
    %c0_i32 = arith.constant 0 : i32
    %c0_i32_0 = arith.constant 0 : i32
    %c0_i32_1 = arith.constant 0 : i32
    return %arg0, %c0_i32, %c0_i32_0 : i32, i32, i32
  }
  func.func @transform_1(%arg0: i32) -> (i32, i32) {
    %c0_i32 = arith.constant 0 : i32
    %c0_i32_0 = arith.constant 0 : i32
    %c0_i32_1 = arith.constant 0 : i32
    return %c0_i32, %c0_i32_0 : i32, i32
  }
  func.func @transform_2(%arg0: i32) -> (i32, i32) {
    %c0_i32 = arith.constant 0 : i32
    %c0_i32_0 = arith.constant 0 : i32
    %c0_i32_1 = arith.constant 0 : i32
    return %c0_i32, %c0_i32_0 : i32, i32
  }
  func.func @transform_3(%arg0: i32) -> (i32, i32) {
    %c0_i32 = arith.constant 0 : i32
    %c0_i32_0 = arith.constant 0 : i32
    %c0_i32_1 = arith.constant 0 : i32
    return %c0_i32, %c0_i32_0 : i32, i32
  }
  func.func @transform_4(%arg0: i32) -> (i32, i32) {
    %c0_i32 = arith.constant 0 : i32
    %c0_i32_0 = arith.constant 0 : i32
    %c0_i32_1 = arith.constant 0 : i32
    return %c0_i32, %c0_i32_0 : i32, i32
  }
  func.func @transform_5(%arg0: i32) -> (i32, i32) {
    %c0_i32 = arith.constant 0 : i32
    %c0_i32_0 = arith.constant 0 : i32
    %c0_i32_1 = arith.constant 0 : i32
    return %c0_i32, %c0_i32_0 : i32, i32
  }
  func.func @transform_6(%arg0: i32) -> (i32, i32) {
    %c0_i32 = arith.constant 0 : i32
    %c0_i32_0 = arith.constant 0 : i32
    %c0_i32_1 = arith.constant 0 : i32
    return %c0_i32, %c0_i32_0 : i32, i32
  }
  func.func @transform_7(%arg0: i32) -> (i32, i32) {
    %c0_i32 = arith.constant 0 : i32
    %c0_i32_0 = arith.constant 0 : i32
    %c0_i32_1 = arith.constant 0 : i32
    return %c0_i32, %c0_i32_0 : i32, i32
  }
  func.func @transform_8(%arg0: i32) -> (i32, i32) {
    %c0_i32 = arith.constant 0 : i32
    %c0_i32_0 = arith.constant 0 : i32
    %c0_i32_1 = arith.constant 0 : i32
    return %c0_i32, %c0_i32_0 : i32, i32
  }
  func.func @transform_9(%arg0: i32) -> (i32, i32) {
    %c0_i32 = arith.constant 0 : i32
    %c0_i32_0 = arith.constant 0 : i32
    %c0_i32_1 = arith.constant 0 : i32
    return %c0_i32, %c0_i32_0 : i32, i32
  }
  func.func @transform_10(%arg0: i32) -> (i32, i32) {
    %c0_i32 = arith.constant 0 : i32
    %c0_i32_0 = arith.constant 0 : i32
    %c0_i32_1 = arith.constant 0 : i32
    return %c0_i32, %c0_i32_0 : i32, i32
  }
  func.func @transform_11(%arg0: i32) -> (i32, i32, i32) {
    %c0_i32 = arith.constant 0 : i32
    %c0_i32_0 = arith.constant 0 : i32
    %c0_i32_1 = arith.constant 0 : i32
    return %arg0, %c0_i32, %c0_i32_0 : i32, i32, i32
  }
}

</mosaic_0001>

<bundles_post_ra>
// kernel: tpu_custom_call.1
= control target key start
LH: loop header
LB: loop body
LE: loop exit
PB: predicated region body
PF: predicated region fallthrough
CT: control target
= control target key end

     0   :  { %s3014_s0 = inlined_call_operand.vmem [shape: f32[2,8,256], index: 0, kind: input, shape index: {}]   ;;  %s3015_s1 = inlined_call_operand.vmem [shape: f32[2,256], index: 1, kind: input, shape index: {}]   ;;  %s3016_s2 = inlined_call_operand.vmem [shape: f32[8,1], index: 2, kind: input, shape index: {}]   ;;  %s3017_s3 = inlined_call_operand.vmem [shape: f32[8,1], index: 3, kind: input, shape index: {}]   ;;  %s3018_s4 = inlined_call_operand.vmem [shape: bf16[24,8], index: 4, kind: input, shape index: {}]   ;;  %s3019_s5 = inlined_call_operand.vmem [shape: f32[24,9], index: 5, kind: input, shape index: {}]   ;;  %s3020_s6 = inlined_call_operand.vmem [shape: f32[2,1], index: 6, kind: input, shape index: {}]   ;;  %s3021_s7 = inlined_call_operand.vmem [shape: bf16[8,8], index: 7, kind: input, shape index: {}]   ;;  %s3022_s8 = inlined_call_operand.vmem [shape: f32[8,1], index: 8, kind: input, shape index: {}]   ;;  %s3023_s9 = inlined_call_operand.vmem [shape: f32[8,1], index: 9, kind: input, shape index: {}]   ;;  %s3024_s10 = inlined_call_operand.vmem [shape: bf16[8,8], index: 10, kind: input, shape index: {}]   ;;  %s3025_s11 = inlined_call_operand.hbm [shape: f32[2,8,256], index: 11, kind: output, shape index: {}]  }
   0x1   :  { %3041 = sst [smem:[#allocation9_spill]] %s3014_s0 }
   0x2   :  { %16 = vsyncpa [#allocation4], 0 }
   0x3   :  { %18 = vsyncpa [#allocation4 + $0x1], 0  ;;  %s2264_s17 = smov 0   ;;  %s2266_s18 = smov 0  }
   0x4   :  { %s2268_s19 = smov 0   ;;  %s2270_s20 = smov 0  }
   0x5 LB: > { %s2285_s21 = sadd.s32 4294967295, %s2179_s20   ;;  %s1962_s22 = sadd.s32 4294967294, %s2179_s20   ;;  %s2179_s20 = sphi %s2270_s20, %s3063_s20   ;;  %s2175_s19 = sphi %s2268_s19, %s3062_s19   ;;  %s2171_s18 = sphi %s2266_s18, %s3061_s18   ;;  %s2167_s17 = sphi %s2264_s17, %s3060_s17  }
   0x6   : > { %s2289_s23 = sadd.s32 1, %s2179_s20   ;;  %s267_s24 = sadd.s32 1, %s2175_s19 }
   0x7   : > { %s264_s25 = ssub.s32 %s2179_s20, %s2289_s23  ;;  %p277_p0 = scmp.ne.s32.totalorder %s2175_s19, %s2171_s18 }
   0x8   : > { %p265_p1 = scmp.eq.s32.totalorder %s264_s25, 0  ;;  %p278_p2 = scmp.eq.s32.totalorder %s2285_s21, 1 }
   0x9   : > { %p283_p3 = scmp.ne.s32.totalorder %s2171_s18, %s2167_s17  ;;  %p284_p4 = scmp.eq.s32.totalorder %s1962_s22, 1 }
   0xa   : > { %s2300_s26 = scalar_select %p265_p1, %s2175_s19, %s267_s24  }
   0xb   : > { %p2302_p5 = por %p278_p2, %p277_p0  ;;  %p2306_p6 = por %p284_p4, %p283_p3 }
   0xc   : > { %p1965_p7 = scmp.ge.s32.totalorder %s2179_s20, 1  ;;  %p340_p8 = scmp.lt.s32.totalorder %s2179_s20, 3 }
   0xe   : > { %p341_p9 = pnand %p1965_p7, %p340_p8 }
  0x10   : > { %344 = sbr.rel (%p341_p9) target bundleno = 2318 (0x90e), region = 64 }
  0x17   : > { %v427_v0 = vld [vmem:[%s3016_s2] sm:$0xff]  ;;  %v2318_v1 = vld [vmem:[%s3019_s5 + $0x8] sm:$0xff]  ;;  %v579_v2 = vlaneseq  ;;  %v3027_v3 = vmov 0   ;;  %v2182_v4 = vmov 1   ;;  %v2183_v7 = vmov 2   ;;  %s2186_s24 = smov 113  }
  0x18   : > { %2058 = vset.pattern.permute.xlu0 %v3027_v3  ;;  %2059 = vset.pattern.permute.xlu1 %v2182_v4  ;;  %v435_v5 = vld [vmem:[%s3017_s3] sm:$0xff]  ;;  %v3033_v10 = vmov 3   ;;  %v3032_v12 = vmov 4   ;;  %v3031_v14 = vmov 5   ;;  %v3029_v17 = vmov 6   ;;  %p380_p10 = scmp.lt.s32.totalorder %s2285_s21, 1 }
  0x19   : > { %430 = vperm.xlu0 %2058, %v427_v0   ;;  %619 = vperm.xlu1 %2059, %v2318_v1   ;;  %v580_v6 = vshrl.u32 %v579_v2, 7  ;;  %v1974_v9 = vld [vmem:[%s3015_s1 + $0x1] ss:$2 sm:$0x3]  ;;  %v3030_v20 = vmov 7   ;;  %s2190_s14 = smov 127  }
  0x1a   : > { %502 = vmatprep.mubr.bf16.mxu0 %v3027_v3  ;;  %v2339_v13 = vld [vmem:[%s3019_s5] sm:$0xff]  ;;  %s381_s13 = scalar_select %p380_p10, %s2285_s21, 1  ;;  %v3026_v22 = vmov 8   ;;  %vm463_vm0 = vcmask 1043456   ;;  %vm456_vm1 = vcmask 64512   ;;  %vm721_vm2 = vcmask 924672  }
  0x1b   : > { %v585_v8 = vsub.s32 1, %v580_v6  ;;  %v581_v15 = vsub.s32 0, %v580_v6  ;;  %v542_v18 = vld [vmem:[%s3015_s1] ss:$2 sm:$0x3]  ;;  %s3044_s0 = sld [smem:[#allocation9_spill]] }
  0x1c   : > { %s1991_s15 = sshll.u32 %s381_s13, 4  ;;  %s2192_s25 = smov 17   ;;  %vm662_vm3 = vcmask 1039360   ;;  %vm968_vm4 = vcmask 7168   ;;  %vm1059_vm5 = vcmask 121856   ;;  %vm1223_vm6 = vcmask 138240  }
  0x1d   : > { %438 = vperm.xlu0 %2058, %v435_v5   ;;  %2060 = vset.pattern.permute.xlu1 %v2183_v7  ;;  %v716_v11 = vrot.slane %v1974_v9, %v585_v8  ;;  %v712_v16 = vrot.slane %v1974_v9, %v581_v15  ;;  %v582_v19 = vrot.slane %v542_v18, %v581_v15  ;;  %s2193_s29 = smov 1   ;;  %s2194_s30 = smov 15   ;;  %v2084_v15 = vld [vmem:[%s3018_s4] sm:$0xff]   ;;  %vm1009_vm7 = vcmask 900096  }
  0x1e   : > { %692 = vperm.xlu1 %2060, %v2318_v1   ;;  %v586_v21 = vrot.slane %v542_v18, %v585_v8  ;;  %s2195_s12 = smov 111   ;;  %s3039_s16 = smov 95   ;;  %vm762_vm8 = vcmask 1031168   ;;  %vm852_vm9 = vcmask 916480   ;;  %vm591_vm10 = vcmask 908288  }
  0x1f   : > { %s2197_s22 = smov 112   ;;  %s2200_s13 = smov 96   ;;  %vm1173_vm11 = vcmask 777216   ;;  %vm1100_vm12 = vcmask 785408   ;;  %vm1264_vm13 = vcmask 769024  }
  0x21   : > { %2061 = vset.pattern.permute.xlu0 %v3033_v10 }
  0x22   : > { %792 = vperm.xlu0 %2061, %v2318_v1   ;;  %2062 = vset.pattern.permute.xlu1 %v3032_v12 }
  0x23   : > { %882 = vperm.xlu1 %2062, %v2318_v1  }
  0x26   : > { %719 = vrot.lane.b32.xlu0 %v716_v11, %s2186_s24 }
  0x27   : > { %2063 = vset.pattern.permute.xlu1 %v3031_v14 }
  0x28   : > { %948 = vperm.xlu1 %2063, %v2318_v1  }
  0x2a   : > { %788 = vperm.xlu0 %2061, %v2339_v13  }
  0x2c   : > { %2064 = vset.pattern.permute.xlu1 %v2183_v7 }
  0x2d   : > { %688 = vperm.xlu1 %2064, %v2339_v13  }
  0x2e   : > { %2068 = vset.pattern.permute.xlu0 %v3031_v14 }
  0x2f   : > { %944 = vperm.xlu0 %2068, %v2339_v13  }
  0x31   : > { %717 = vrot.lane.b32.xlu1 %v712_v16, %s2186_s24  ;;  %s2366_s24 = scalar_lea.vmem %s3044_s0, %s1991_s15  ;;  %s3037_s15 = smov 94  }
  0x32   : > { %2065 = vset.pattern.permute.xlu1 %v3029_v17  ;;  %v386_v23 = vld [vmem:[%s2366_s24] sm:$0xff]  ;;  %v387_v24 = vld [vmem:[%s2366_s24 + $0x8] sm:$0xff] }
  0x33   : > { %2069 = vset.pattern.permute.xlu0 %v3029_v17  ;;  %v388_v25 = vrot.slane %v386_v23, 4  ;;  %v394_v26 = vrot.slane %v387_v24, 4 }
  0x34   : > { %1035 = vperm.xlu0 %2069, %v2339_v13  }
  0x35   : > { %1039 = vperm.xlu1 %2065, %v2318_v1   ;;  %v389_v27 = vadd.f32 %v388_v25, %v386_v23  ;;  %v395_v28 = vadd.f32 %v394_v26, %v387_v24 }
  0x37   : > { %v390_v29 = vrot.slane %v389_v27, 2  ;;  %v396_v30 = vrot.slane %v395_v28, 2 }
  0x38   : > { %2070 = vset.pattern.permute.xlu0 %v3030_v20 }
  0x39   : > { %1130 = vperm.xlu0 %2070, %v2318_v1   ;;  %808 = vrot.lane.b32.xlu1 %v582_v19, %s2190_s14  ;;  %v391_v31 = vadd.f32 %v390_v29, %v389_v27  ;;  %v397_v32 = vadd.f32 %v396_v30, %v395_v28 }
  0x3a   : > { %2066 = vset.pattern.permute.xlu1 %v3026_v22 }
  0x3b   : > { %v392_v33 = vrot.slane %v391_v31, 1  ;;  %v398_v34 = vrot.slane %v397_v32, 1 }
  0x3d   : > { %1126 = vperm.xlu0 %2070, %v2339_v13   ;;  %810 = vrot.lane.b32.xlu1 %v586_v21, %s2190_s14  ;;  %v393_v35 = vadd.f32 %v392_v33, %v391_v31  ;;  %v399_v36 = vadd.f32 %v398_v34, %v397_v32 }
  0x3f   : > { %v401_v37 = vmul.f32 0.125, %v393_v35  ;;  %v402_v38 = vmul.f32 0.125, %v399_v36 }
  0x41   : > { %1221 = vrot.lane.b32.xlu0 %v716_v11, %s2192_s25  ;;  %1203 = vperm.xlu1 %2066, %v2318_v1   ;;  %v403_v39 = vsub.f32 %v386_v23, %v401_v37  ;;  %v404_v40 = vsub.f32 %v387_v24, %v402_v38 }
  0x42   : > { %2073 = vset.pattern.permute.xlu0 %v3027_v3 }
  0x43   : > { %v405_v41 = vmul.f32 %v403_v39, %v403_v39  ;;  %v406_v42 = vmul.f32 %v404_v40, %v404_v40 }
  0x45   : > { %556 = vperm.xlu0 %2073, %v2339_v13   ;;  %2067 = vset.pattern.permute.xlu1 %v3032_v12  ;;  %v407_v43 = vrot.slane %v405_v41, 4  ;;  %v413_v44 = vrot.slane %v406_v42, 4 }
  0x46   : > { %878 = vperm.xlu1 %2067, %v2339_v13  }
  0x47   : > { %v408_v45 = vadd.f32 %v407_v43, %v405_v41  ;;  %v414_v46 = vadd.f32 %v413_v44, %v406_v42 }
  0x49   : > { %2074 = vset.pattern.permute.xlu0 %v2182_v4  ;;  %v409_v47 = vrot.slane %v408_v45, 2  ;;  %v415_v48 = vrot.slane %v414_v46, 2 }
  0x4a   : > { %615 = vperm.xlu0 %2074, %v2339_v13   ;;  %964 = vrot.lane.b32.xlu1 %v712_v16, %s2193_s29 }
  0x4b   : > { %2071 = vset.pattern.permute.xlu1 %v3026_v22  ;;  %v410_v49 = vadd.f32 %v409_v47, %v408_v45  ;;  %v416_v50 = vadd.f32 %v415_v48, %v414_v46 }
  0x4d   : > { %v411_v51 = vrot.slane %v410_v49, 1  ;;  %v417_v52 = vrot.slane %v416_v50, 1 }
  0x4e   : > { %966 = vrot.lane.b32.xlu1 %v716_v11, %s2193_s29  ;;  %s2198_s29 = smov 126  }
  0x4f   : > { %v412_v53 = vadd.f32 %v411_v51, %v410_v49  ;;  %v418_v54 = vadd.f32 %v417_v52, %v416_v50 }
  0x51   : > { %v419_v55 = vmul.f32 0.125, %v412_v53  ;;  %v420_v56 = vmul.f32 0.125, %v418_v54 }
  0x52   : > { %1055 = vrot.lane.b32.xlu1 %v582_v19, %s2194_s30 }
  0x53   : > { %v421_v57 = vadd.f32 1e-05, %v419_v55  ;;  %v422_v58 = vadd.f32 1e-05, %v420_v56 }
  0x55   : > { %2087 = vrsqrt.f32 %v421_v57 }
  0x56   : > { %1057 = vrot.lane.b32.xlu1 %v586_v21, %s2194_s30  ;;  %2089 = vrsqrt.f32 %v422_v58  ;;  %s2199_s30 = smov 110  }
  0x5a   : > { %1199 = vperm.xlu1 %2071, %v2339_v13  }
  0x5e   : > { %1219 = vrot.lane.b32.xlu1 %v712_v16, %s2192_s25 }
  0x5f   : > { %2072 = vset.pattern.permute.xlu1 %v3027_v3  ;;  %v2088_v59 = vpop.eup %2087 }
  0x60   : > { %v2090_v60 = vpop.eup %2089  ;;  %v425_v61 = vmul.f32 %v2088_v59, %v403_v39 }
  0x61   : > { %v426_v62 = vmul.f32 %v2090_v60, %v404_v40 }
  0x62   : > { %561 = vperm.xlu1 %2072, %v2318_v1  }
  0x66   : > { %587 = vrot.lane.b32.xlu1 %v582_v19, %s2195_s12 }
  0x67   : > { %2075 = vset.pattern.permute.xlu1 %v2183_v7 }
  0x6a   : > { %589 = vrot.lane.b32.xlu1 %v586_v21, %s2195_s12 }
  0x98   : > { %v431_v63 = vpop.permute.xlu0 %430  ;;  %v2386_v0 = vpop.permute.xlu1 %619 }
  0x99   : > { %v629_v1 = vmul.f32 0.0, %v2386_v0  ;;  %v433_v2 = vmul.f32 %v431_v63, %v425_v61  ;;  %v434_v4 = vmul.f32 %v431_v63, %v426_v62 }
  0x9b   : > { %650 = vrot.lane.b32.xlu0 %v629_v1, %s2190_s14 }
  0x9c   : > { %v439_v5 = vpop.permute.xlu0 %438 }
  0x9d   : > { %v442_v6 = vadd.f32 %v439_v5, %v434_v4  ;;  %v441_v7 = vadd.f32 %v439_v5, %v433_v2  ;;  %v2390_v8 = vpop.permute.xlu1 %692 }
  0x9e   : > { %v702_v40 = vmul.f32 0.0, %v2390_v8 }
  0x9f   : > { %v447_v9 = vpack.c.bf16 %v442_v6, %v442_v6  ;;  %v446_v11 = vpack.c.bf16 %v441_v7, %v441_v7 }
  0xa1   : > { %1971 = vmatprep.subr.msk.bf16.mxu0 %vm463_vm0, %v447_v9  ;;  %v465_v13 = vsel %vm463_vm0, %v446_v11, 0  ;;  %v2397_v16 = vpop.permute.xlu0 %792 }
  0xa2   : > { %471 = vmatpush1.bf16.msra.mxu0 %v465_v13  ;;  %v2399_v18 = vpop.permute.xlu1 %882  ;;  %v802_v29 = vmul.f32 0.0, %v2397_v16 }
  0xa5   : > { %1972 = vmatmul.mubr.msk.bf16.vlgmr.msra.gmra.mrb[0].mxu0 %vm456_vm1, %v2084_v15  ;;  %v2402_v19 = vpop.permute.xlu0 %719 }
  0xa6   : > { %512 = vmatprep.mubr.bf16.mxu0 %v3027_v3 }
  0xa7   : > { %v2405_v21 = vpop.permute.xlu1 %948 }
  0xa8   : > { %v960_v43 = vmul.f32 0.0, %v2405_v21 }
  0xa9   : > { %v2407_v23 = vpop.permute.xlu0 %788 }
  0xaa   : > { %v799_v49 = vmul.f32 0.0, %v2407_v23 }
  0xac   : > { %v2409_v24 = vpop.permute.xlu1 %688 }
  0xad   : > { %v699_v45 = vmul.f32 0.0, %v2409_v24 }
  0xae   : > { %v2411_v25 = vpop.permute.xlu0 %944 }
  0xaf   : > { %v957_v53 = vmul.f32 0.0, %v2411_v25 }
  0xb0   : > { %v2413_v26 = vpop.permute.xlu1 %717 }
  0xb1   : > { %v729_v46 = vmul.f32 %v2413_v26, %v702_v40  ;;  %v726_v50 = vmul.f32 %v2413_v26, %v699_v45  ;;  %v2488_v7 = vsel %vm721_vm2, %v2413_v26, %v2402_v19 }
  0xb3   : > { %v2415_v27 = vpop.permute.xlu0 %1035 }
  0xb4   : > { %v2417_v28 = vpop.permute.xlu1 %1039 }
  0xb5   : > { %v1051_v52 = vmul.f32 0.0, %v2417_v28 }
  0xb8   : > { %v2420_v30 = vpop.permute.xlu0 %1130  ;;  %v2422_v31 = vpop.permute.xlu1 %808 }
  0xb9   : > { %v1142_v32 = vmul.f32 0.0, %v2420_v30  ;;  %v819_v33 = vmul.f32 %v2422_v31, %v802_v29  ;;  %v816_v55 = vmul.f32 %v2422_v31, %v799_v49 }
  0xbb   : > { %1165 = vrot.lane.b32.xlu0 %v1142_v32, %s3039_s16 }
  0xbc   : > { %v2427_v34 = vpop.permute.xlu0 %1126  ;;  %v2429_v35 = vpop.permute.xlu1 %810 }
  0xbd   : > { %v2500_v15 = vsel %vm662_vm3, %v2422_v31, %v2429_v35 }
  0xbf   : > { %840 = vrot.lane.b32.xlu0 %v819_v33, %s2197_s22 }
  0xc0   : > { %v2432_v36 = vpop.permute.xlu0 %1221  ;;  %v2434_v37 = vpop.permute.xlu1 %1203 }
  0xc1   : > { %3045 = vst [vmem:[#allocation6_spill] sm:$0xff] %v2432_v36  ;;  %v1215_v54 = vmul.f32 0.0, %v2434_v37 }
  0xc3   : > { %v1233_v59 = vmul.f32 %v2432_v36, %v1215_v54 }
  0xc4   : > { %v2436_v38 = vpop.permute.xlu0 %556 }
  0xc5   : > { %v879_v39 = vpop.permute.xlu1 %878 }
  0xc9   : > { %v616_v41 = vpop.permute.xlu0 %615  ;;  %v2439_v42 = vpop.permute.xlu1 %964 }
  0xca   : > { %v626_v44 = vmul.f32 0.0, %v616_v41 }
  0xcc   : > { %644 = vrot.lane.b32.xlu1 %v626_v44, %s2190_s14 }
  0xcd   : > { %v2445_v47 = vpop.permute.xlu1 %966 }
  0xce   : > { %v978_v48 = vmul.f32 %v2445_v47, %v960_v43  ;;  %v975_v58 = vmul.f32 %v2445_v47, %v957_v53 }
  0xd0   : > { %750 = vrot.lane.b32.xlu1 %v729_v46, %s2198_s29  ;;  %1001 = vrot.lane.b32.xlu0 %v978_v48, %s2199_s30 }
  0xd1   : > { %v2452_v51 = vpop.permute.xlu1 %1055 }
  0xd4   : > { %744 = vrot.lane.b32.xlu1 %v726_v50, %s2198_s29 }
  0xd5   : > { %v2459_v56 = vpop.permute.xlu1 %1057 }
  0xd6   : > { %v1069_v57 = vmul.f32 %v2459_v56, %v1051_v52 }
  0xd8   : > { %834 = vrot.lane.b32.xlu1 %v816_v55, %s2197_s22  ;;  %1092 = vrot.lane.b32.xlu0 %v1069_v57, %s2200_s13 }
  0xd9   : > { %v1200_v54 = vpop.permute.xlu1 %1199 }
  0xdc   : > { %995 = vrot.lane.b32.xlu0 %v975_v58, %s2199_s30  ;;  %1256 = vrot.lane.b32.xlu1 %v1233_v59, %s3037_s15 }
 0x178   : > { %v2468_v60 = vpop.f32.mrb[0].mxu0 }
 0x179   : > { %v2470_v61 = vpop.f32.mrb[1].mxu0  ;;  %v889_v62 = vmul.f32 %v879_v39, %v2468_v60  ;;  %v627_v63 = vmul.f32 %v616_v41, %v2468_v60  ;;  %v700_v6 = vmul.f32 %v2409_v24, %v2468_v60  ;;  %v800_v13 = vmul.f32 %v2407_v23, %v2468_v60 }
 0x17a   : > { %v2474_v1 = vpop.f32.mrb[2].mxu0  ;;  %v890_v4 = vmul.f32 %v879_v39, %v2470_v61  ;;  %v628_v5 = vmul.f32 %v616_v41, %v2470_v61  ;;  %v1046_v33 = vmul.f32 %v2415_v27, %v2468_v60  ;;  %v955_v41 = vmul.f32 %v2411_v25, %v2468_v60 }
 0x17b   : > { %901 = vrot.lane.b32.xlu1 %v889_v62, %s2195_s12  ;;  %646 = vrot.lane.b32.xlu0 %v627_v63, %s2190_s14  ;;  %v2478_v2 = vpop.f32.mrb[3].mxu0  ;;  %v727_v9 = vmul.f32 %v2488_v7, %v700_v6  ;;  %v630_v11 = vmul.f32 %v2386_v0, %v2474_v1  ;;  %v817_v29 = vmul.f32 %v2500_v15, %v800_v13  ;;  %v2559_v62 = vpop.permute.xlu1 %1219 }
 0x17c   : > { %v891_v32 = vmul.f32 %v2399_v18, %v2474_v1  ;;  %v1140_v39 = vmul.f32 %v2420_v30, %v2474_v1  ;;  %v1064_v40 = vmul.f32 %v2452_v51, %v1046_v33  ;;  %v701_v43 = vmul.f32 %v2409_v24, %v2470_v61  ;;  %3046 = vst [vmem:[#allocation7_spill] sm:$0xff] %v2559_v62 }
 0x17d   : > { %v973_v44 = vmul.f32 %v2439_v42, %v955_v41  ;;  %v801_v46 = vmul.f32 %v2407_v23, %v2470_v61  ;;  %v631_v24 = vmul.f32 %v2386_v0, %v2478_v2  ;;  %v1141_v49 = vmul.f32 %v2420_v30, %v2478_v2 }
 0x17e   : > { %v728_v45 = vmul.f32 %v2402_v19, %v701_v43  ;;  %v892_v23 = vmul.f32 %v2399_v18, %v2478_v2  ;;  %v956_v50 = vmul.f32 %v2411_v25, %v2470_v61  ;;  %v703_v52 = vmul.f32 %v2390_v8, %v2474_v1 }
 0x17f   : > { %903 = vrot.lane.b32.xlu0 %v890_v4, %s2195_s12  ;;  %648 = vrot.lane.b32.xlu1 %v628_v5, %s2190_s14  ;;  %v818_v48 = vmul.f32 %v2429_v35, %v801_v46  ;;  %v2541_v0 = vsel %vm968_vm4, %v2439_v42, %v2445_v47  ;;  %v803_v18 = vmul.f32 %v2397_v16, %v2474_v1 }
 0x180   : > { %v974_v53 = vmul.f32 %v2541_v0, %v956_v50  ;;  %v730_v30 = vmul.f32 %v2488_v7, %v703_v52  ;;  %v958_v25 = vmul.f32 %v2405_v21, %v2474_v1  ;;  %v1213_v58 = vmul.f32 %v2434_v37, %v2474_v1  ;;  %v651_v52 = vpop.permute.xlu0 %650 }
 0x181   : > { %v820_v55 = vmul.f32 %v2500_v15, %v803_v18  ;;  %v1049_v59 = vmul.f32 %v2417_v28, %v2474_v1  ;;  %v704_v5 = vmul.f32 %v2390_v8, %v2478_v2  ;;  %v804_v6 = vmul.f32 %v2397_v16, %v2478_v2 }
 0x182   : > { %v976_v57 = vmul.f32 %v2439_v42, %v958_v25  ;;  %v1231_v63 = vmul.f32 %v2559_v62, %v1213_v58  ;;  %v2578_v8 = vsel %vm1059_vm5, %v2452_v51, %v2459_v56  ;;  %v959_v33 = vmul.f32 %v2405_v21, %v2478_v2 }
 0x183   : > { %746 = vrot.lane.b32.xlu0 %v727_v9, %s2198_s29  ;;  %652 = vrot.lane.b32.xlu1 %v630_v11, %s2190_s14  ;;  %v1067_v4 = vmul.f32 %v2452_v51, %v1049_v59  ;;  %v1048_v9 = vmul.f32 0.0, %v2415_v27  ;;  %v731_v11 = vmul.f32 %v2402_v19, %v704_v5  ;;  %v821_v13 = vmul.f32 %v2429_v35, %v804_v6 }
 0x184   : > { %v1214_v41 = vmul.f32 %v2434_v37, %v2478_v2  ;;  %v2598_v21 = vsel %vm1223_vm6, %v2559_v62, %v2432_v36  ;;  %v1139_v37 = vmul.f32 0.0, %v2427_v34  ;;  %v1211_v46 = vmul.f32 %v1200_v54, %v2470_v61 }
 0x185   : > { %v1066_v16 = vmul.f32 %v2459_v56, %v1048_v9  ;;  %vm1434_vm5 = vcmask 27648  }
 0x187   : > { %836 = vrot.lane.b32.xlu0 %v817_v29, %s2197_s22  ;;  %905 = vrot.lane.b32.xlu1 %v891_v32, %s2195_s12  ;;  %v1047_v29 = vmul.f32 %v2415_v27, %v2470_v61  ;;  %v977_v27 = vmul.f32 %v2541_v0, %v959_v33 }
 0x189   : > { %v1065_v32 = vmul.f32 %v2578_v8, %v1047_v29 }
 0x18b   : > { %1161 = vrot.lane.b32.xlu0 %v1140_v39, %s3039_s16  ;;  %1082 = vrot.lane.b32.xlu1 %v1064_v40, %s2200_s13  ;;  %v1137_v39 = vmul.f32 %v2427_v34, %v2468_v60  ;;  %v1050_v40 = vmul.f32 %v2417_v28, %v2478_v2  ;;  %v1138_v28 = vmul.f32 %v2427_v34, %v2470_v61  ;;  %v562_v34 = vpop.permute.xlu1 %561 }
 0x18c   : > { %v574_v12 = vmul.f32 %v562_v34, %v2478_v2 }
 0x18d   : > { %v1068_v43 = vmul.f32 %v2578_v8, %v1050_v40 }
 0x18f   : > { %991 = vrot.lane.b32.xlu0 %v973_v44, %s2199_s30  ;;  %748 = vrot.lane.b32.xlu1 %v728_v45, %s2198_s29  ;;  %v1232_v44 = vmul.f32 %v2598_v21, %v1214_v41  ;;  %v1210_v45 = vmul.f32 %v1200_v54, %v2468_v60  ;;  %v2617_v50 = vpop.permute.xlu1 %587 }
 0x193   : > { %838 = vrot.lane.b32.xlu1 %v818_v48, %s2197_s22  ;;  %654 = vrot.lane.b32.xlu0 %v631_v24, %s2190_s14  ;;  %v1212_v48 = vmul.f32 0.0, %v1200_v54  ;;  %v1228_v24 = vmul.f32 %v2559_v62, %v1210_v45 }
 0x197   : > { %1163 = vrot.lane.b32.xlu1 %v1141_v49, %s3039_s16  ;;  %907 = vrot.lane.b32.xlu0 %v892_v23, %s2195_s12  ;;  %v1229_v49 = vmul.f32 %v2598_v21, %v1211_v46  ;;  %v1230_v23 = vmul.f32 %v2432_v36, %v1212_v48  ;;  %v572_v46 = vmul.f32 0.0, %v562_v34 }
 0x19b   : > { %993 = vrot.lane.b32.xlu1 %v974_v53, %s2199_s30  ;;  %752 = vrot.lane.b32.xlu0 %v730_v30, %s2198_s29  ;;  %v2619_v53 = vpop.permute.xlu1 %589  ;;  %v2621_v30 = vpop.permute.xlu0 %1165 }
 0x19c   : > { %3047 = vst [vmem:[#allocation8_spill] sm:$0xff] %v2619_v53  ;;  %v601_v2 = vmul.f32 %v2619_v53, %v574_v12 }
 0x19f   : > { %842 = vrot.lane.b32.xlu1 %v820_v55, %s2197_s22  ;;  %997 = vrot.lane.b32.xlu0 %v976_v57, %s2199_s30  ;;  %v645_v18 = vpop.permute.xlu1 %644  ;;  %v841_v25 = vpop.permute.xlu0 %840 }
 0x1a3   : > { %1252 = vrot.lane.b32.xlu1 %v1231_v63, %s3037_s15  ;;  %1088 = vrot.lane.b32.xlu0 %v1067_v4, %s2200_s13  ;;  %v751_v54 = vpop.permute.xlu1 %750  ;;  %v2623_v55 = vpop.permute.xlu0 %1001 }
 0x1a7   : > { %754 = vrot.lane.b32.xlu1 %v731_v11, %s2198_s29  ;;  %844 = vrot.lane.b32.xlu0 %v821_v13, %s2197_s22  ;;  %v2625_v57 = vpop.permute.xlu1 %744  ;;  %v2627_v58 = vpop.permute.xlu0 %1092 }
 0x1ab   : > { %1086 = vrot.lane.b32.xlu1 %v1066_v16, %s2200_s13  ;;  %1084 = vrot.lane.b32.xlu0 %v1065_v32, %s2200_s13  ;;  %v2629_v59 = vpop.permute.xlu1 %834  ;;  %v996_v63 = vpop.permute.xlu0 %995 }
 0x1af   : > { %999 = vrot.lane.b32.xlu1 %v977_v27, %s2199_s30  ;;  %1155 = vrot.lane.b32.xlu0 %v1137_v39, %s3039_s16  ;;  %v2631_v4 = vpop.permute.xlu1 %1256  ;;  %v571_v39 = vmul.f32 %v2436_v38, %v2470_v61 }
 0x1b3   : > { %1090 = vrot.lane.b32.xlu1 %v1068_v43, %s2200_s13  ;;  %1254 = vrot.lane.b32.xlu0 %v1232_v44, %s3037_s15  ;;  %v598_v43 = vmul.f32 %v2619_v53, %v571_v39 }
 0x1b7   : > { %1157 = vrot.lane.b32.xlu1 %v1138_v28, %s3039_s16  ;;  %1159 = vrot.lane.b32.xlu0 %v1139_v37, %s3039_s16 }
 0x1bb   : > { %1246 = vrot.lane.b32.xlu1 %v1228_v24, %s3037_s15  ;;  %1248 = vrot.lane.b32.xlu0 %v1229_v49, %s3037_s15 }
 0x1bf   : > { %1250 = vrot.lane.b32.xlu1 %v1230_v23, %s3037_s15  ;;  %v599_v23 = vmul.f32 %v2617_v50, %v572_v46 }
 0x1ed   : > { %v2633_v5 = vpop.permute.xlu1 %901  ;;  %v2635_v6 = vpop.permute.xlu0 %646 }
 0x1f1   : > { %v2637_v9 = vpop.permute.xlu0 %903  ;;  %v2639_v11 = vpop.permute.xlu1 %648 }
 0x1f2   : > { %v680_v44 = vadd.f32 %v2639_v11, %v598_v43 }
 0x1f5   : > { %v2641_v13 = vpop.permute.xlu0 %746  ;;  %v653_v29 = vpop.permute.xlu1 %652 }
 0x1f6   : > { %v665_v61 = vsel %vm662_vm3, %v651_v52, %v653_v29 }
 0x1f7   : > { %v681_v3 = vadd.f32 %v665_v61, %v599_v23  ;;  %v569_v61 = vmul.f32 0.0, %v2436_v38 }
 0x1f9   : > { %v2643_v16 = vpop.permute.xlu0 %836  ;;  %v2645_v32 = vpop.permute.xlu1 %905  ;;  %v596_v62 = vmul.f32 %v2617_v50, %v569_v61 }
 0x1fd   : > { %v2647_v33 = vpop.permute.xlu0 %1161  ;;  %v2649_v27 = vpop.permute.xlu1 %1082 }
 0x201   : > { %v2653_v40 = vpop.permute.xlu0 %991  ;;  %v749_v41 = vpop.permute.xlu1 %748 }
 0x202   : > { %v780_v45 = vadd.f32 %v749_v41, %v680_v44 }
 0x205   : > { %v2657_v28 = vpop.permute.xlu1 %838  ;;  %v655_v37 = vpop.permute.xlu0 %654 }
 0x206   : > { %v870_v48 = vadd.f32 %v2657_v28, %v780_v45 }
 0x208   : > { %v927_v39 = vadd.f32 %v2637_v9, %v870_v48  ;;  %v573_v48 = vmul.f32 %v562_v34, %v2474_v1  ;;  %v570_v34 = vmul.f32 %v2436_v38, %v2468_v60  ;;  %v664_v38 = vsel %vm662_vm3, %v2635_v6, %v2639_v11 }
 0x209   : > { %v2660_v24 = vpop.permute.xlu1 %1163  ;;  %v2662_v49 = vpop.permute.xlu0 %907 }
 0x20d   : > { %v2667_v43 = vpop.permute.xlu1 %993  ;;  %v753_v22 = vpop.permute.xlu0 %752 }
 0x20e   : > { %v1011_v44 = vsel %vm1009_vm7, %v2667_v43, %v996_v63  ;;  %v765_v45 = vsel %vm762_vm8, %v751_v54, %v753_v22 }
 0x20f   : > { %v2672_v17 = vadd.f32 %v1011_v44, %v927_v39  ;;  %v781_v20 = vadd.f32 %v765_v45, %v681_v3  ;;  %v2684_v3 = vsel %vm591_vm10, %v2617_v50, %v2619_v53 }
 0x210   : > { %v600_v23 = vmul.f32 %v2684_v3, %v573_v48  ;;  %v597_v60 = vmul.f32 %v2684_v3, %v570_v34  ;;  %v853_v48 = vsel %vm852_vm9, %v2629_v59, %v2643_v16  ;;  %v854_v59 = vsel %vm852_vm9, %v2643_v16, %v2657_v28 }
 0x211   : > { %v843_v14 = vpop.permute.xlu1 %842  ;;  %v998_v52 = vpop.permute.xlu0 %997  ;;  %v913_v28 = vsel %vm591_vm10, %v2633_v5, %v2637_v9  ;;  %v1177_v9 = vsel %vm1173_vm11, %v2660_v24, %v2621_v30 }
 0x212   : > { %v855_v46 = vsel %vm852_vm9, %v841_v25, %v843_v14  ;;  %v666_v25 = vsel %vm662_vm3, %v653_v29, %v655_v37 }
 0x213   : > { %v871_v10 = vadd.f32 %v855_v46, %v781_v20  ;;  %v683_v20 = vadd.f32 %v655_v37, %v601_v2  ;;  %v682_v39 = vadd.f32 %v666_v25, %v600_v23 }
 0x215   : > { %v928_v36 = vadd.f32 %v2645_v32, %v871_v10  ;;  %v2678_v63 = vpop.permute.xlu1 %1252  ;;  %v1089_v54 = vpop.permute.xlu0 %1088  ;;  %v663_v10 = vsel %vm662_vm3, %v645_v18, %v2635_v6 }
 0x216   : > { %v678_v18 = vadd.f32 %v663_v10, %v596_v62  ;;  %v764_v62 = vsel %vm762_vm8, %v2641_v13, %v749_v41 }
 0x217   : > { %v1028_v1 = vadd.f32 %v998_v52, %v928_v36  ;;  %v763_v36 = vsel %vm762_vm8, %v2625_v57, %v2641_v13 }
 0x218   : > { %v778_v25 = vadd.f32 %v763_v36, %v678_v18 }
 0x219   : > { %v1119_v44 = vadd.f32 %v1089_v54, %v1028_v1  ;;  %v755_v45 = vpop.permute.xlu1 %754  ;;  %v845_v46 = vpop.permute.xlu0 %844  ;;  %v679_v1 = vadd.f32 %v664_v38, %v597_v60 }
 0x21a   : > { %v766_v12 = vsel %vm762_vm8, %v753_v22, %v755_v45  ;;  %v783_v53 = vadd.f32 %v755_v45, %v683_v20  ;;  %v856_v23 = vsel %vm852_vm9, %v843_v14, %v845_v46  ;;  %v868_v20 = vadd.f32 %v853_v48, %v778_v25 }
 0x21b   : > { %v1192_v29 = vadd.f32 %v2647_v33, %v1119_v44  ;;  %v782_v37 = vadd.f32 %v766_v12, %v682_v39  ;;  %v779_v10 = vadd.f32 %v764_v62, %v679_v1  ;;  %v914_v14 = vsel %vm591_vm10, %v2645_v32, %v2662_v49 }
 0x21c   : > { %v873_v61 = vadd.f32 %v845_v46, %v783_v53  ;;  %v925_v16 = vadd.f32 %v2633_v5, %v868_v20  ;;  %v1176_v5 = vsel %vm1173_vm11, %v2647_v33, %v2660_v24 }
 0x21d   : > { %v2707_v22 = vadd.f32 %v2678_v63, %v1192_v29  ;;  %v1087_v2 = vpop.permute.xlu1 %1086  ;;  %v1085_v57 = vpop.permute.xlu0 %1084  ;;  %v872_v6 = vadd.f32 %v856_v23, %v782_v37  ;;  %v869_v44 = vadd.f32 %v854_v59, %v779_v10 }
 0x21e   : > { %v930_v53 = vadd.f32 %v2662_v49, %v873_v61  ;;  %v1025_v32 = vadd.f32 %v2653_v40, %v925_v16  ;;  %v1102_v1 = vsel %vm1100_vm12, %v1085_v57, %v1087_v2 }
 0x21f   : > { %v1320_v11 = vmul.f32 %v2707_v22, %v2707_v22  ;;  %v929_v45 = vadd.f32 %v914_v14, %v872_v6  ;;  %v926_v37 = vadd.f32 %v913_v28, %v869_v44 }
 0x220   : > { %v1116_v61 = vadd.f32 %v2649_v27, %v1025_v32 }
 0x221   : > { %v1000_v34 = vpop.permute.xlu1 %999  ;;  %1326 = vrot.lane.b32.xlu0 %v1320_v11, %s2192_s25  ;;  %v1156_v39 = vpop.permute.xlu0 %1155 }
 0x222   : > { %v1012_v13 = vsel %vm1009_vm7, %v998_v52, %v1000_v34  ;;  %v1013_v41 = vsel %vm1009_vm7, %v1000_v34, %v2623_v55  ;;  %v1010_v55 = vsel %vm1009_vm7, %v2653_v40, %v2667_v43  ;;  %v1101_v40 = vsel %vm1100_vm12, %v2649_v27, %v1085_v57 }
 0x223   : > { %v1030_v46 = vadd.f32 %v1013_v41, %v930_v53  ;;  %v1029_v12 = vadd.f32 %v1012_v13, %v929_v45  ;;  %v1026_v43 = vadd.f32 %v1010_v55, %v926_v37  ;;  %v1189_v6 = vadd.f32 %v1156_v39, %v1116_v61 }
 0x224   : > { %v1118_v57 = vadd.f32 %v1102_v1, %v2672_v17 }
 0x225   : > { %v1091_v36 = vpop.permute.xlu1 %1090  ;;  %v1255_v29 = vpop.permute.xlu0 %1254  ;;  %v1117_v23 = vadd.f32 %v1101_v40, %v1026_v43 }
 0x226   : > { %v1103_v49 = vsel %vm1100_vm12, %v1089_v54, %v1091_v36  ;;  %v1104_v52 = vsel %vm1100_vm12, %v1091_v36, %v2627_v58  ;;  %v1267_v25 = vsel %vm1264_vm13, %v2678_v63, %v1255_v29  ;;  %v1268_v33 = vsel %vm1264_vm13, %v1255_v29, %v2631_v4  ;;  %v2085_v4 = vld [vmem:[%s3018_s4 + $0x8] ss:$0 sps:$4 sm:$0xff]  }
 0x227   : > { %v1120_v18 = vadd.f32 %v1103_v49, %v1029_v12  ;;  %v1121_v38 = vadd.f32 %v1104_v52, %v1030_v46  ;;  %1973 = vmatmul.mubr.msk.bf16.gmra.mrb[4].mxu0 %vm456_vm1, %v2085_v4 }
 0x229   : > { %v1193_v54 = vadd.f32 %v1176_v5, %v1120_v18  ;;  %v1194_v60 = vadd.f32 %v1177_v9, %v1121_v38  ;;  %v1158_v48 = vpop.permute.xlu1 %1157  ;;  %v1160_v58 = vpop.permute.xlu0 %1159 }
 0x22a   : > { %v1174_v62 = vsel %vm1173_vm11, %v1156_v39, %v1158_v48  ;;  %v1175_v10 = vsel %vm1173_vm11, %v1158_v48, %v1160_v58 }
 0x22b   : > { %v2750_v30 = vadd.f32 %v1267_v25, %v1193_v54  ;;  %v2752_v24 = vadd.f32 %v1268_v33, %v1194_v60  ;;  %v1190_v11 = vadd.f32 %v1174_v62, %v1117_v23  ;;  %v1191_v14 = vadd.f32 %v1175_v10, %v1118_v57 }
 0x22d   : > { %v1247_v20 = vpop.permute.xlu1 %1246  ;;  %v1249_v59 = vpop.permute.xlu0 %1248  ;;  %v1321_v27 = vmul.f32 %v2750_v30, %v2750_v30  ;;  %v1322_v63 = vmul.f32 %v2752_v24, %v2752_v24 }
 0x22e   : > { %v2763_v53 = vadd.f32 %v1247_v20, %v1189_v6  ;;  %v1265_v2 = vsel %vm1264_vm13, %v1247_v20, %v1249_v59 }
 0x22f   : > { %v1281_v34 = vadd.f32 %v1265_v2, %v1190_v11  ;;  %1328 = vrot.lane.b32.xlu1 %v1321_v27, %s2192_s25  ;;  %1330 = vrot.lane.b32.xlu0 %v1322_v63, %s2192_s25 }
 0x230   : > { %v1289_v39 = vmul.f32 %v2763_v53, %v2763_v53 }
 0x231   : > { %v1251_v13 = vpop.permute.xlu1 %1250  ;;  %v1290_v41 = vmul.f32 %v1281_v34, %v1281_v34 }
 0x232   : > { %v1266_v44 = vsel %vm1264_vm13, %v1249_v59, %v1251_v13 }
 0x233   : > { %v1282_v45 = vadd.f32 %v1266_v44, %v1191_v14  ;;  %1295 = vrot.lane.b32.xlu1 %v1289_v39, %s2192_s25  ;;  %1297 = vrot.lane.b32.xlu0 %v1290_v41, %s2192_s25 }
 0x235   : > { %v1291_v17 = vmul.f32 %v1282_v45, %v1282_v45 }
 0x237   : > { %1299 = vrot.lane.b32.xlu1 %v1291_v17, %s2192_s25 }
 0x293   : > { %v1327_v46 = vpop.permute.xlu0 %1326 }
 0x2a1   : > { %v1329_v16 = vpop.permute.xlu1 %1328  ;;  %v1331_v28 = vpop.permute.xlu0 %1330 }
 0x2a2   : > { %v1332_v12 = vsel %vm1223_vm6, %v1327_v46, %v1329_v16  ;;  %v1333_v36 = vsel %vm1223_vm6, %v1329_v16, %v1331_v28  ;;  %v3048_v16 = vmov 3   ;;  %v3049_v28 = vmov 4  }
 0x2a3   : > { %v1336_v29 = vadd.f32 %v1333_v36, %v1332_v12  ;;  %v3050_v36 = vmov 5  }
 0x2a5   : > { %v1296_v32 = vpop.permute.xlu1 %1295  ;;  %1337 = vadd.xlane.f32.xlu0 %v1336_v29  ;;  %v1298_v55 = vpop.permute.xlu0 %1297  ;;  %v3051_v29 = vmov 7  }
 0x2a6   : > { %v1301_v52 = vsel %vm1223_vm6, %v1296_v32, %v1298_v55  ;;  %v3052_v32 = vmov 6  }
 0x2a9   : > { %v1300_v49 = vpop.permute.xlu1 %1299 }
 0x2aa   : > { %v1302_v37 = vsel %vm1223_vm6, %v1298_v55, %v1300_v49  ;;  %v3053_v55 = vmov 0   ;;  %v3054_v49 = vmov 8  }
 0x2ab   : > { %v1305_v18 = vadd.f32 %v1302_v37, %v1301_v52 }
 0x2ad   : > { %1306 = vadd.xlane.f32.xlu1 %v1305_v18 }
 0x2fa   : > { %v2790_v13 = vpop.f32.mrb[4].mxu0 }
 0x2fb   : > { %v2801_v17 = vpop.f32.mrb[5].mxu0 }
 0x2fc   : > { %v518_v46 = vpop.f32.mrb[6].mxu0 }
 0x2fd   : > { %v519_v12 = vpop.f32.mrb[7].mxu0 }
 0x332   : > { %v1338_v38 = vpop.xlane.xlu0 %1337 }
 0x333   : > { %2091 = vrsqrt.f32 %v1338_v38  ;;  %vm1341_vm14 = vcmp.eq.f32.partialorder %v1338_v38, inf  ;;  %v1344_v54 = vand.u32 2147483648, %v1338_v38  ;;  %vm1343_vm15 = vcmp.eq.f32.partialorder %v1338_v38, 0.0 }
 0x33a   : > { %v1307_v5 = vpop.xlane.xlu1 %1306 }
 0x33b   : > { %2093 = vrsqrt.f32 %v1307_v5  ;;  %vm1310_vm2 = vcmp.eq.f32.partialorder %v1307_v5, inf  ;;  %v1313_v25 = vand.u32 2147483648, %v1307_v5  ;;  %vm1312_vm4 = vcmp.eq.f32.partialorder %v1307_v5, 0.0 }
 0x33d   : > { %v2092_v9 = vpop.eup %2091 }
 0x33e   : > { %v1340_v40 = vmul.f32 %v2092_v9, %v1338_v38 }
 0x340   : > { %v1342_v43 = vsel %vm1341_vm14, %v1338_v38, %v1340_v40 }
 0x341   : > { %v1345_v60 = vsel %vm1343_vm15, %v1344_v54, %v1342_v43 }
 0x342   : > { %v1346_v61 = vmax.f32 %v1345_v60, 1e-12 }
 0x344   : > { %2095 = vrcp.f32 %v1346_v61 }
 0x345   : > { %v2094_v48 = vpop.eup %2093 }
 0x346   : > { %v1309_v58 = vmul.f32 %v2094_v48, %v1307_v5 }
 0x348   : > { %v1311_v33 = vsel %vm1310_vm2, %v1307_v5, %v1309_v58 }
 0x349   : > { %v1314_v62 = vsel %vm1312_vm4, %v1313_v25, %v1311_v33 }
 0x34a   : > { %v1315_v23 = vmax.f32 %v1314_v62, 1e-12 }
 0x34c   : > { %2097 = vrcp.f32 %v1315_v23 }
 0x34e   : > { %v2096_v1 = vpop.eup %2095 }
 0x34f   : > { %v1350_v63 = vmul.f32 %v2096_v1, %v2752_v24  ;;  %v1349_v4 = vmul.f32 %v2096_v1, %v2750_v30  ;;  %v1348_v39 = vmul.f32 %v2096_v1, %v2707_v22 }
 0x351   : > { %v1358_v10 = vpack.c.bf16 %v1350_v63, %v1350_v63  ;;  %v1357_v2 = vpack.c.bf16 %v1349_v4, %v1349_v4  ;;  %v1356_v14 = vpack.c.bf16 %v1348_v39, %v1348_v39 }
 0x353   : > { %v1527_v30 = vrot.slane %v1358_v10, 2  ;;  %v1526_v24 = vrot.slane %v1357_v2, 2  ;;  %v1525_v22 = vrot.slane %v1356_v14, 2 }
 0x356   : > { %v2098_v6 = vpop.eup %2097 }
 0x357   : > { %v1319_v11 = vmul.f32 %v2098_v6, %v1282_v45  ;;  %v1318_v20 = vmul.f32 %v2098_v6, %v1281_v34  ;;  %v1317_v57 = vmul.f32 %v2098_v6, %v2763_v53  ;;  %v541_v45 = vld [vmem:[%s3019_s5 + $0x10] sm:$0xff] }
 0x359   : > { %v1355_v59 = vpack.c.bf16 %v1319_v11, %v1319_v11  ;;  %v1354_v27 = vpack.c.bf16 %v1318_v20, %v1318_v20  ;;  %v1353_v34 = vpack.c.bf16 %v1317_v57, %v1317_v57 }
 0x35b   : > { %1369 = vrot.lane.b32.xlu0 %v1355_v59, %s2192_s25  ;;  %1367 = vrot.lane.b32.xlu1 %v1354_v27, %s2192_s25  ;;  %v1513_v53 = vrot.slane %v1354_v27, 2  ;;  %v1512_v41 = vrot.slane %v1353_v34, 2  ;;  %v1514_v44 = vrot.slane %v1355_v59, 2 }
 0x35f   : > { %1383 = vrot.lane.b32.xlu1 %v1358_v10, %s2192_s25  ;;  %1381 = vrot.lane.b32.xlu0 %v1357_v2, %s2192_s25 }
 0x363   : > { %1365 = vrot.lane.b32.xlu1 %v1353_v34, %s2192_s25  ;;  %1379 = vrot.lane.b32.xlu0 %v1356_v14, %s2192_s25 }
 0x367   : > { %1532 = vrot.lane.b32.xlu1 %v1527_v30, %s2192_s25  ;;  %1530 = vrot.lane.b32.xlu0 %v1526_v24, %s2192_s25 }
 0x36b   : > { %1517 = vrot.lane.b32.xlu1 %v1513_v53, %s2192_s25  ;;  %1528 = vrot.lane.b32.xlu0 %v1525_v22, %s2192_s25  ;;  %v1351_v53 = vld [vmem:[%s3020_s6] sm:$0x3] }
 0x36c   : > { %1993 = vpush %v1351_v53 }
 0x36f   : > { %1515 = vrot.lane.b32.xlu1 %v1512_v41, %s2192_s25  ;;  %1519 = vrot.lane.b32.xlu0 %v1514_v44, %s2192_s25 }
 0x373   : > { %696 = vperm.xlu1 %2075, %v541_v45   ;;  %623 = vperm.xlu0 %2074, %v541_v45  }
 0x377   : > { %2076 = vset.pattern.permute.xlu1 %v3048_v16  ;;  %2077 = vset.pattern.permute.xlu0 %v3049_v28 }
 0x378   : > { %796 = vperm.xlu1 %2076, %v541_v45   ;;  %886 = vperm.xlu0 %2077, %v541_v45  }
 0x37c   : > { %2078 = vset.pattern.permute.xlu1 %v3050_v36  ;;  %2080 = vset.pattern.permute.xlu0 %v3051_v29 }
 0x37d   : > { %952 = vperm.xlu1 %2078, %v541_v45   ;;  %1134 = vperm.xlu0 %2080, %v541_v45  }
 0x381   : > { %2079 = vset.pattern.permute.xlu1 %v3052_v32  ;;  %2082 = vset.pattern.permute.xlu0 %v3053_v55 }
 0x382   : > { %1043 = vperm.xlu1 %2079, %v541_v45   ;;  %566 = vperm.xlu0 %2082, %v541_v45  }
 0x386   : > { %2081 = vset.pattern.permute.xlu1 %v3054_v49 }
 0x387   : > { %1207 = vperm.xlu1 %2081, %v541_v45  }
 0x38b   : > { %2083 = vset.pattern.permute.xlu1 %v3053_v55 }
 0x3cd   : > { %v1368_v52 = vpop.permute.xlu1 %1367  ;;  %v1370_v37 = vpop.permute.xlu0 %1369 }
 0x3ce   : > { %v1373_v18 = vsel %vm1223_vm6, %v1368_v52, %v1370_v37 }
 0x3cf   : > { %1421 = vmatprep.mubr.bf16.mxu1 %v1373_v18 }
 0x3d1   : > { %v1384_v38 = vpop.permute.xlu1 %1383  ;;  %v1382_v5 = vpop.permute.xlu0 %1381 }
 0x3d2   : > { %v1386_v9 = vsel %vm1223_vm6, %v1382_v5, %v1384_v38 }
 0x3d3   : > { %1389 = vmatprep.subr.bf16.mxu1 %v1386_v9 }
 0x3d5   : > { %v1366_v40 = vpop.permute.xlu1 %1365  ;;  %v1380_v43 = vpop.permute.xlu0 %1379 }
 0x3d6   : > { %v1385_v54 = vsel %vm1223_vm6, %v1380_v43, %v1382_v5  ;;  %v1372_v33 = vsel %vm1223_vm6, %v1366_v40, %v1368_v52 }
 0x3d7   : > { %1390 = vmatpush1.bf16.xpose.msra.mxu1 %v1385_v54 }
 0x3d9   : > { %v1533_v60 = vpop.permute.xlu1 %1532  ;;  %v1531_v48 = vpop.permute.xlu0 %1530 }
 0x3da   : > { %v1535_v58 = vsel %vm1223_vm6, %v1531_v48, %v1533_v60 }
 0x3db   : > { %1538 = vmatprep.subr.bf16.mxu0 %v1535_v58 }
 0x3dd   : > { %v1518_v61 = vpop.permute.xlu1 %1517  ;;  %v1529_v25 = vpop.permute.xlu0 %1528 }
 0x3de   : > { %v1534_v62 = vsel %vm1223_vm6, %v1529_v25, %v1531_v48  ;;  %1422 = vmatmul.mubr.bf16.vlgmr.msra.gmra.mrb[0].mxu1 %v1372_v33 }
 0x3df   : > { %1539 = vmatpush1.bf16.xpose.msra.mxu0 %v1534_v62  ;;  %1501 = vmatprep.mubr.bf16.mxu1 %v3053_v55 }
 0x3e1   : > { %v1520_v23 = vpop.permute.xlu0 %1519  ;;  %v1516_v1 = vpop.permute.xlu1 %1515 }
 0x3e2   : > { %v1522_v6 = vsel %vm1223_vm6, %v1518_v61, %v1520_v23  ;;  %v1521_v11 = vsel %vm1223_vm6, %v1516_v1, %v1518_v61 }
 0x3e3   : > { %1570 = vmatprep.mubr.bf16.mxu0 %v1522_v6 }
 0x3e6   : > { %1571 = vmatmul.mubr.bf16.vlgmr.msra.gmra.mrb[8].mxu0 %v1521_v11 }
 0x3e7   : > { %1704 = vmatprep.mubr.bf16.mxu0 %v3053_v55 }
 0x3f2   : > { %v697_v20 = vpop.permute.xlu1 %696  ;;  %v624_v59 = vpop.permute.xlu0 %623 }
 0x3f3   : > { %v632_v27 = vmul.f32 0.0, %v624_v59  ;;  %v633_v63 = vmul.f32 %v624_v59, %v2790_v13  ;;  %v705_v57 = vmul.f32 0.0, %v697_v20  ;;  %v634_v34 = vmul.f32 %v624_v59, %v2801_v17 }
 0x3f4   : > { %v706_v22 = vmul.f32 %v697_v20, %v2790_v13  ;;  %v707_v28 = vmul.f32 %v697_v20, %v2801_v17 }
 0x3f5   : > { %656 = vrot.lane.b32.xlu1 %v632_v27, %s2190_s14 }
 0x3f6   : > { %v733_v16 = vmul.f32 %v2488_v7, %v706_v22  ;;  %v734_v29 = vmul.f32 %v2402_v19, %v707_v28 }
 0x3f7   : > { %v797_v4 = vpop.permute.xlu1 %796  ;;  %v887_v39 = vpop.permute.xlu0 %886 }
 0x3f8   : > { %v807_v10 = vmul.f32 %v797_v4, %v2801_v17  ;;  %v894_v14 = vmul.f32 %v887_v39, %v2801_v17  ;;  %v805_v36 = vmul.f32 0.0, %v797_v4  ;;  %v893_v49 = vmul.f32 %v887_v39, %v2790_v13 }
 0x3f9   : > { %658 = vrot.lane.b32.xlu1 %v633_v63, %s2190_s14  ;;  %v3057_v63 = vld [vmem:[#allocation7_spill] sm:$0xff] }
 0x3fa   : > { %v824_v2 = vmul.f32 %v2429_v35, %v807_v10  ;;  %v732_v35 = vmul.f32 %v2413_v26, %v705_v57  ;;  %v1578_v26 = vrot.slane %v1351_v53, 1  ;;  %v822_v7 = vmul.f32 %v2422_v31, %v805_v36 }
 0x3fc   : > { %v953_v30 = vpop.permute.xlu1 %952  ;;  %850 = vrot.lane.b32.xlu0 %v824_v2, %s2197_s22  ;;  %1995 = vpush %v1578_v26  ;;  %v1135_v33 = vpop.permute.xlu0 %1134 }
 0x3fd   : > { %660 = vrot.lane.b32.xlu1 %v634_v34, %s2190_s14  ;;  %v962_v24 = vmul.f32 %v953_v30, %v2801_v17  ;;  %s1994_s14 = spop %1993  ;;  %v963_v58 = vmul.f32 0.0, %v953_v30  ;;  %v1143_v62 = vmul.f32 %v1135_v33, %v2790_v13  ;;  %v1145_v6 = vmul.f32 0.0, %v1135_v33 }
 0x3fe   : > { %v1431_v52 = vstv %s1994_s14  ;;  %s2202_s14 = smov 124  }
 0x3ff   : > { %v980_v44 = vmul.f32 %v2541_v0, %v962_v24  ;;  %v806_v0 = vmul.f32 %v797_v4, %v2790_v13  ;;  %v981_v61 = vmul.f32 %v2445_v47, %v963_v58 }
 0x400   : > { %911 = vrot.lane.b32.xlu0 %v894_v14, %s2195_s12 }
 0x401   : > { %v1044_v41 = vpop.permute.xlu1 %1043  ;;  %756 = vrot.lane.b32.xlu1 %v732_v35, %s2198_s29  ;;  %v823_v32 = vmul.f32 %v2500_v15, %v806_v0  ;;  %v567_v24 = vpop.permute.xlu0 %566 }
 0x402   : > { %v1052_v45 = vmul.f32 %v1044_v41, %v2790_v13  ;;  %v1053_v46 = vmul.f32 %v1044_v41, %v2801_v17  ;;  %v1054_v23 = vmul.f32 0.0, %v1044_v41  ;;  %v577_v36 = vmul.f32 %v567_v24, %v2801_v17 }
 0x404   : > { %1005 = vrot.lane.b32.xlu0 %v980_v44, %s2199_s30  ;;  %v1070_v12 = vmul.f32 %v2452_v51, %v1052_v45  ;;  %v961_v51 = vmul.f32 %v953_v30, %v2790_v13  ;;  %v1071_v25 = vmul.f32 %v2578_v8, %v1053_v46  ;;  %v1072_v20 = vmul.f32 %v2459_v56, %v1054_v23  ;;  %v3058_v56 = vld [vmem:[#allocation6_spill] sm:$0xff] }
 0x405   : > { %758 = vrot.lane.b32.xlu1 %v733_v16, %s2198_s29  ;;  %v1144_v8 = vmul.f32 %v1135_v33, %v2801_v17  ;;  %v575_v45 = vmul.f32 0.0, %v567_v24 }
 0x406   : > { %v979_v19 = vmul.f32 %v2439_v42, %v961_v51  ;;  %v1208_v1 = vpop.permute.xlu1 %1207 }
 0x407   : > { %v1217_v11 = vmul.f32 %v1208_v1, %v2801_v17  ;;  %v1216_v59 = vmul.f32 %v1208_v1, %v2790_v13  ;;  %v1218_v27 = vmul.f32 0.0, %v1208_v1  ;;  %v602_v26 = vmul.f32 %v2617_v50, %v575_v45 }
 0x408   : > { %1094 = vrot.lane.b32.xlu0 %v1070_v12, %s2200_s13  ;;  %v576_v12 = vmul.f32 %v567_v24, %v2790_v13 }
 0x409   : > { %760 = vrot.lane.b32.xlu1 %v734_v29, %s2198_s29  ;;  %v1235_v47 = vmul.f32 %v2598_v21, %v1217_v11  ;;  %s3056_s29 = smov 94   ;;  %v1234_v4 = vmul.f32 %v3057_v63, %v1216_v59  ;;  %v1236_v10 = vmul.f32 %v3058_v56, %v1218_v27 }
 0x40d   : > { %846 = vrot.lane.b32.xlu1 %v822_v7, %s2197_s22 }
 0x411   : > { %848 = vrot.lane.b32.xlu1 %v823_v32, %s2197_s22 }
 0x415   : > { %909 = vrot.lane.b32.xlu1 %v893_v49, %s2195_s12  ;;  %s3055_s12 = smov 95  }
 0x419   : > { %1003 = vrot.lane.b32.xlu1 %v979_v19, %s2199_s30 }
 0x42d   : > { %s1996_s22 = spop %1995 }
 0x42e   : > { %v1580_v9 = vstv %s1996_s22 }
 0x467   : > { %v657_v2 = vpop.permute.xlu1 %656 }
 0x46b   : > { %v659_v57 = vpop.permute.xlu1 %658 }
 0x46c   : > { %v667_v16 = vsel %vm662_vm3, %v657_v2, %v659_v57 }
 0x46d   : > { %v684_v0 = vadd.f32 %v667_v16, %v602_v26 }
 0x46e   : > { %v851_v22 = vpop.permute.xlu0 %850 }
 0x46f   : > { %v661_v21 = vpop.permute.xlu1 %660 }
 0x470   : > { %v668_v51 = vsel %vm662_vm3, %v659_v57, %v661_v21  ;;  %vm1462_vm3 = vcmask 1041408  }
 0x472   : > { %v912_v41 = vpop.permute.xlu0 %911 }
 0x473   : > { %v757_v39 = vpop.permute.xlu1 %756 }
 0x476   : > { %v1006_v46 = vpop.permute.xlu0 %1005 }
 0x477   : > { %v759_v34 = vpop.permute.xlu1 %758 }
 0x478   : > { %v767_v29 = vsel %vm762_vm8, %v757_v39, %v759_v34 }
 0x479   : > { %v784_v19 = vadd.f32 %v767_v29, %v684_v0 }
 0x47a   : > { %v1095_v7 = vpop.permute.xlu0 %1094 }
 0x47b   : > { %v761_v14 = vpop.permute.xlu1 %760 }
 0x47c   : > { %v768_v50 = vsel %vm762_vm8, %v759_v34, %v761_v14 }
 0x47f   : > { %v847_v30 = vpop.permute.xlu1 %846 }
 0x483   : > { %v849_v53 = vpop.permute.xlu1 %848 }
 0x484   : > { %v857_v32 = vsel %vm852_vm9, %v847_v30, %v849_v53 }
 0x487   : > { %v910_v35 = vpop.permute.xlu1 %909 }
 0x48b   : > { %v1004_v44 = vpop.permute.xlu1 %1003 }
 0x4b1   : > { %v1423_v37 = vpop.f32.mrb[0].mxu1 }
 0x4b2   : > { %v2859_v31 = vmul.f32 %v1431_v52, %v1423_v37  ;;  %v1425_v18 = vpop.f32.mrb[1].mxu1  ;;  %v603_v52 = vmul.f32 %v2684_v3, %v576_v12  ;;  %v3059_v37 = vld [vmem:[#allocation8_spill] sm:$0xff]  ;;  %v1014_v3 = vsel %vm1009_vm7, %v1004_v44, %v1006_v46 }
 0x4b3   : > { %v1426_v15 = vpop.f32.mrb[2].mxu1  ;;  %v604_v18 = vmul.f32 %v3059_v37, %v577_v36 }
 0x4b4   : > { %v1427_v38 = vpop.f32.mrb[3].mxu1  ;;  %v1435_v5 = vsel %vm1434_vm5, %v2859_v31, -inf  ;;  %v874_v15 = vadd.f32 %v857_v32, %v784_v19  ;;  %v685_v13 = vadd.f32 %v668_v51, %v603_v52 }
 0x4b5   : > { %1436 = vmax.xlane.f32.xlu1 %v1435_v5  ;;  %v686_v38 = vadd.f32 %v661_v21, %v604_v18 }
 0x4b9   : > { %v1572_v40 = vpop.f32.mrb[8].mxu0 }
 0x4ba   : > { %v2863_v43 = vmul.f32 %v1580_v9, %v1572_v40  ;;  %v1574_v42 = vpop.f32.mrb[9].mxu0  ;;  %v858_v9 = vsel %vm852_vm9, %v849_v53, %v851_v22  ;;  %v785_v40 = vadd.f32 %v768_v50, %v685_v13 }
 0x4bb   : > { %v1575_v54 = vpop.f32.mrb[10].mxu0  ;;  %v786_v42 = vadd.f32 %v761_v14, %v686_v38 }
 0x4bc   : > { %v1576_v60 = vpop.f32.mrb[11].mxu0  ;;  %v1583_v48 = vsel %vm1434_vm5, %v2863_v43, -inf  ;;  %v915_v54 = vsel %vm591_vm10, %v910_v35, %v912_v41 }
 0x4bd   : > { %1584 = vmax.xlane.f32.xlu0 %v1583_v48  ;;  %v931_v60 = vadd.f32 %v910_v35, %v874_v15  ;;  %v875_v48 = vadd.f32 %v858_v9, %v785_v40  ;;  %v876_v33 = vadd.f32 %v851_v22, %v786_v42 }
 0x4bf   : > { %v933_v59 = vadd.f32 %v912_v41, %v876_v33  ;;  %v1811_v33 = vld [vmem:[%s3023_s9] sm:$0xff] }
 0x4c6   : > { %1007 = vrot.lane.b32.xlu1 %v981_v61, %s2199_s30 }
 0x4ca   : > { %1096 = vrot.lane.b32.xlu1 %v1071_v25, %s2200_s13  ;;  %v1031_v25 = vadd.f32 %v1004_v44, %v931_v60 }
 0x4ce   : > { %1167 = vrot.lane.b32.xlu1 %v1143_v62, %s3055_s12  ;;  %v932_v62 = vadd.f32 %v915_v54, %v875_v48 }
 0x4d0   : > { %v1032_v1 = vadd.f32 %v1014_v3, %v932_v62 }
 0x4d2   : > { %1171 = vrot.lane.b32.xlu1 %v1145_v6, %s3055_s12 }
 0x4d3   : > { %1098 = vrot.lane.b32.xlu0 %v1072_v20, %s2200_s13  ;;  %s1992_s13 = sshll.u32 %s2285_s21, 8 }
 0x4d4   : > { %s2972_s22 = scalar_lea.hbm %s3025_s11, %s1992_s13 }
 0x4d6   : > { %1260 = vrot.lane.b32.xlu1 %v1235_v47, %s3056_s29  ;;  %v1122_v47 = vadd.f32 %v1095_v7, %v1031_v25 }
 0x4d7   : > { %1169 = vrot.lane.b32.xlu0 %v1144_v8, %s3055_s12  ;;  %s2203_s12 = smov [#allocation3]  }
 0x4db   : > { %1258 = vrot.lane.b32.xlu0 %v1234_v4, %s3056_s29 }
 0x4df   : > { %1262 = vrot.lane.b32.xlu0 %v1236_v10, %s3056_s29  ;;  %s377_s29 = sand.u32 1, %s2171_s18  }
 0x4e0   : > { %s1966_s30 = sshll.u32 %s377_s29, 4  ;;  %s1889_s21 = scalar_lea.sflag [#allocation4], %s377_s29 }
 0x4e1   : > { %s379_s16 = scalar_lea.vmem [#allocation3], %s1966_s30  ;;  %s2121_s30 = sshll.u32 %s2203_s12, 4  ;;  %s2122_s30 = int_to_ptr.vmem [resolvable:$false] %s2121_s30 }
 0x4e2   : > { %s1903_s15 = sshll.u32 %s379_s16, 4  ;;  %s2123_s0 = scalar_lea.vmem %s2122_s30, 512  ;;  %s2974_s15 = int_to_ptr.vmem [resolvable:$true] %s1903_s15 }
 0x4e3   : > { %p2124_p0 = scmp.lt.s32.totalorder %s2974_s15, %s2122_s30 }
 0x542   : > { %v2887_v28 = vpop.xlane.xlu1 %1436 }
 0x543   : > { %v1438_v12 = vsub.f32 %v2859_v31, %v2887_v28  ;;  %v1803_v31 = vld [vmem:[%s3022_s8] sm:$0xff] }
 0x545   : > { %v1439_v36 = vmul.f32 1.442695, %v1438_v12 }
 0x546   : > { %v1008_v49 = vpop.permute.xlu1 %1007 }
 0x547   : > { %v1015_v20 = vsel %vm1009_vm7, %v1006_v46, %v1008_v49  ;;  %vm1458_vm7 = vcmask 31744  }
 0x548   : > { %v1033_v56 = vadd.f32 %v1015_v20, %v933_v59 }
 0x54a   : > { %v1097_v17 = vpop.permute.xlu1 %1096  ;;  %v1585_v5 = vpop.xlane.xlu0 %1584 }
 0x54b   : > { %v1105_v23 = vsel %vm1100_vm12, %v1095_v7, %v1097_v17  ;;  %v1586_v16 = vsub.f32 %v2863_v43, %v1585_v5  ;;  %v1352_v43 = vld [vmem:[%s3021_s7] sm:$0xf] }
 0x54c   : > { %v1123_v27 = vadd.f32 %v1105_v23, %v1032_v1  ;;  %v1979_v28 = vcombine.low %v1352_v43, %v1352_v43 }
 0x54d   : > { %v1587_v26 = vmul.f32 1.442695, %v1586_v16 }
 0x54e   : > { %v1168_v58 = vpop.permute.xlu1 %1167  ;;  %v1099_v61 = vpop.permute.xlu0 %1098 }
 0x54f   : > { %v1195_v63 = vadd.f32 %v1168_v58, %v1122_v47  ;;  %v1106_v4 = vsel %vm1100_vm12, %v1097_v17, %v1099_v61  ;;  %2099 = vpow2.f32 %v1587_v26 }
 0x550   : > { %v1124_v14 = vadd.f32 %v1106_v4, %v1033_v56  ;;  %2101 = vpow2.f32 %v1439_v36 }
 0x552   : > { %v1172_v6 = vpop.permute.xlu1 %1171  ;;  %v1170_v11 = vpop.permute.xlu0 %1169 }
 0x553   : > { %v1178_v8 = vsel %vm1173_vm11, %v1168_v58, %v1170_v11  ;;  %v1179_v21 = vsel %vm1173_vm11, %v1170_v11, %v1172_v6 }
 0x554   : > { %v1196_v10 = vadd.f32 %v1178_v8, %v1123_v27  ;;  %v1197_v53 = vadd.f32 %v1179_v21, %v1124_v14 }
 0x556   : > { %v1261_v2 = vpop.permute.xlu1 %1260  ;;  %v1259_v57 = vpop.permute.xlu0 %1258 }
 0x557   : > { %v1269_v39 = vsel %vm1264_vm13, %v1259_v57, %v1261_v2  ;;  %v1286_v34 = vadd.f32 %v1259_v57, %v1195_v63 }
 0x558   : > { %v1287_v30 = vadd.f32 %v1269_v39, %v1196_v10 }
 0x559   : > { %v1359_v24 = vpack.c.bf16 %v1286_v34, %v1286_v34  ;;  %v2100_v29 = vpop.eup %2099 }
 0x55a   : > { %v1360_v22 = vpack.c.bf16 %v1287_v30, %v1287_v30  ;;  %v1263_v35 = vpop.permute.xlu0 %1262  ;;  %v1589_v0 = vsel %vm1434_vm5, %v2100_v29, 0.0  ;;  %v2102_v7 = vpop.eup %2101 }
 0x55b   : > { %v1270_v41 = vsel %vm1264_vm13, %v1261_v2, %v1263_v35  ;;  %1450 = vrot.lane.b32.xlu0 %v1359_v24, %s2192_s25  ;;  %v1595_v45 = vrot.slane %v1359_v24, 2  ;;  %v1441_v32 = vsel %vm1434_vm5, %v2102_v7, 0.0  ;;  %v2115_v35 = vld [vmem:[%s2366_s24] sm:$0xff] }
 0x55c   : > { %v1288_v44 = vadd.f32 %v1270_v41, %v1197_v53  ;;  %1452 = vrot.lane.b32.xlu1 %v1360_v22, %s2192_s25  ;;  %v1596_v51 = vrot.slane %v1360_v22, 2 }
 0x55e   : > { %v1361_v46 = vpack.c.bf16 %v1288_v44, %v1288_v44 }
 0x55f   : > { %1598 = vrot.lane.b32.xlu0 %v1595_v45, %s2192_s25  ;;  %v2116_v45 = vld [vmem:[%s2366_s24 + $0x8] sm:$0xff]  ;;  %s2117_s24 = scalar_lea.vmem %s2974_s15, 256 }
 0x560   : > { %1454 = vrot.lane.b32.xlu1 %v1361_v46, %s2192_s25  ;;  %v1597_v49 = vrot.slane %v1361_v46, 2  ;;  %p2118_p11 = scmp.ne.s32.totalorder %s2974_s15, %s2117_s24  ;;  %p2125_p1 = scmp.lt.s32.totalorder %s2123_s0, %s2117_s24 }
 0x562   : > { %p2119_p12 = pnand %p2118_p11, %p2302_p5  ;;  %p2126_p2 = por %p2125_p1, %p2124_p0 }
 0x564   : > { %p2120_p13 = pneg %p2119_p12 }
 0x566   : > { %p2127_p3 = pnand %p2126_p2, %p2120_p13 }
 0x57e   : > { %1590 = vadd.xlane.f32.xlu0 %v1589_v0 }
 0x584   : > { %1442 = vadd.xlane.f32.xlu1 %v1441_v32 }
 0x594   : > { %1602 = vrot.lane.b32.xlu0 %v1597_v49, %s2192_s25 }
 0x595   : > { %1600 = vrot.lane.b32.xlu1 %v1596_v51, %s2192_s25 }
 0x598   : > { %1806 = vperm.xlu0 %2082, %v1803_v31  }
 0x599   : > { %1661 = vrot.lane.b32.xlu1 %v1979_v28, %s2202_s14 }
 0x59d   : > { %1814 = vperm.xlu1 %2083, %v1811_v33  }
 0x5cd   : > { %v1451_v19 = vpop.permute.xlu0 %1450 }
 0x5ce   : > { %v1453_v52 = vpop.permute.xlu1 %1452 }
 0x5cf   : > { %v1456_v37 = vsel %vm1223_vm6, %v1451_v19, %v1453_v52 }
 0x5d0   : > { %v1464_v15 = vsel %vm1462_vm3, %v1456_v37, 0 }
 0x5d1   : > { %v1599_v13 = vpop.permute.xlu0 %1598 }
 0x5d2   : > { %v1455_v18 = vpop.permute.xlu1 %1454 }
 0x5d3   : > { %v1457_v50 = vsel %vm1223_vm6, %v1453_v52, %v1455_v18 }
 0x5d4   : > { %1975 = vmatprep.subr.msk.bf16.mxu1 %vm1462_vm3, %v1457_v50 }
 0x5d5   : > { %1470 = vmatpush1.bf16.msra.mxu1 %v1464_v15 }
 0x60b   : > { %v1591_v38 = vpop.xlane.xlu0 %1590 }
 0x60f   : > { %v1603_v5 = vpop.permute.xlu0 %1602 }
 0x611   : > { %v1443_v17 = vpop.xlane.xlu1 %1442 }
 0x612   : > { %2103 = vrcp.f32 %v1443_v17 }
 0x613   : > { %2105 = vrcp.f32 %v1591_v38 }
 0x615   : > { %v1601_v9 = vpop.permute.xlu1 %1600 }
 0x616   : > { %v1605_v40 = vsel %vm1223_vm6, %v1601_v9, %v1603_v5  ;;  %v1604_v60 = vsel %vm1223_vm6, %v1599_v13, %v1601_v9 }
 0x617   : > { %1977 = vmatprep.subr.msk.bf16.mxu1 %vm1462_vm3, %v1605_v40  ;;  %v1610_v61 = vsel %vm1462_vm3, %v1604_v60, 0 }
 0x619   : > { %v1662_v2 = vpop.permute.xlu1 %1661 }
 0x61c   : > { %v2104_v42 = vpop.eup %2103 }
 0x61d   : > { %v1445_v54 = vmul.f32 %v2104_v42, %v2102_v7  ;;  %v2106_v58 = vpop.eup %2105 }
 0x61e   : > { %v1593_v3 = vmul.f32 %v2106_v58, %v2100_v29 }
 0x61f   : > { %v1446_v48 = vpack.c.bf16 %v1445_v54, %v1445_v54 }
 0x620   : > { %v1594_v25 = vpack.c.bf16 %v1593_v3, %v1593_v3 }
 0x621   : > { %1976 = vmatmul.mubr.msk.bf16.vlgmr.msra.gmra.mrb[4].mxu1 %vm1458_vm7, %v1446_v48 }
 0x622   : > { %1616 = vmatpush1.bf16.msra.mxu1 %v1610_v61  ;;  %1647 = vmatprep.mubr.bf16.mxu1 %v3053_v55 }
 0x629   : > { %1978 = vmatmul.mubr.msk.bf16.vlgmr.msra.gmra.mrb[8].mxu1 %vm1458_vm7, %v1594_v25 }
 0x62a   : > { %1754 = vmatprep.mubr.bf16.mxu1 %v3053_v55 }
 0x6f4   : > { %v1503_v62 = vpop.f32.mrb[4].mxu1 }
 0x6f5   : > { %v1510_v23 = vpack.c.bf16 %v1503_v62, %v1503_v62  ;;  %v1505_v1 = vpop.f32.mrb[5].mxu1 }
 0x6f6   : > { %v1511_v6 = vpack.c.bf16 %v1505_v1, %v1505_v1  ;;  %v1507_v11 = vpop.f32.mrb[6].mxu1  ;;  %v1807_v1 = vpop.permute.xlu0 %1806 }
 0x6f7   : > { %v1717_v20 = vsel %vm1462_vm3, %v1510_v23, 0  ;;  %v1508_v47 = vpop.f32.mrb[7].mxu1 }
 0x6f8   : > { %1982 = vmatprep.subr.msk.bf16.mxu1 %vm1462_vm3, %v1511_v6  ;;  %v1815_v6 = vpop.permute.xlu1 %1814 }
 0x6f9   : > { %1723 = vmatpush1.bf16.msra.mxu1 %v1717_v20 }
 0x6fc   : > { %v1649_v8 = vpop.f32.mrb[8].mxu1  ;;  %1983 = vmatmul.mubr.msk.bf16.vlgmr.msra.gmra.mrb[12].mxu1 %vm1458_vm7, %v1352_v43 }
 0x6fd   : > { %v1656_v59 = vpack.c.bf16 %v1649_v8, %v1649_v8  ;;  %v1651_v27 = vpop.f32.mrb[9].mxu1 }
 0x6fe   : > { %v1657_v63 = vpack.c.bf16 %v1651_v27, %v1651_v27  ;;  %v1653_v4 = vpop.f32.mrb[10].mxu1 }
 0x6ff   : > { %v1667_v56 = vsel %vm1462_vm3, %v1656_v59, 0  ;;  %v1654_v10 = vpop.f32.mrb[11].mxu1 }
 0x700   : > { %1980 = vmatprep.subr.msk.bf16.mxu0 %vm1462_vm3, %v1657_v63 }
 0x701   : > { %1673 = vmatpush1.bf16.msra.mxu0 %v1667_v56  ;;  %v1819_v56 = vld [vmem:[%s3024_s10] sm:$0xf] }
 0x704   : > { %1981 = vmatmul.mubr.msk.bf16.vlgmr.msra.gmra.mrb[12].mxu0 %vm1458_vm7, %v1662_v2 }
 0x705   : > { %1863 = vmatprep.mubr.bf16.mxu0 %v3053_v55 }
 0x7cf   : > { %v1756_v57 = vpop.f32.mrb[12].mxu1 }
 0x7d0   : > { %v1758_v21 = vpop.f32.mrb[13].mxu1 }
 0x7d1   : > { %v1760_v39 = vpop.f32.mrb[14].mxu1 }
 0x7d2   : > { %v1761_v34 = vpop.f32.mrb[15].mxu1 }
 0x7d7   : > { %v1706_v14 = vpop.f32.mrb[12].mxu0 }
 0x7d8   : > { %v1757_v30 = vadd.f32 %v1756_v57, %v1706_v14  ;;  %v1708_v24 = vpop.f32.mrb[13].mxu0 }
 0x7d9   : > { %v1759_v53 = vadd.f32 %v1758_v21, %v1708_v24  ;;  %v1710_v22 = vpop.f32.mrb[14].mxu0 }
 0x7da   : > { %v2948_v41 = vadd.f32 %v2115_v35, %v1757_v30  ;;  %v1711_v44 = vpop.f32.mrb[15].mxu0 }
 0x7db   : > { %v2951_v46 = vadd.f32 %v2116_v45, %v1759_v53 }
 0x7dc   : > { %v1765_v16 = vrot.slane %v2948_v41, 4 }
 0x7dd   : > { %v1771_v55 = vrot.slane %v2951_v46, 4 }
 0x7de   : > { %v1766_v26 = vadd.f32 %v1765_v16, %v2948_v41 }
 0x7df   : > { %v1772_v12 = vadd.f32 %v1771_v55, %v2951_v46 }
 0x7e0   : > { %v1767_v36 = vrot.slane %v1766_v26, 2 }
 0x7e1   : > { %v1773_v29 = vrot.slane %v1772_v12, 2 }
 0x7e2   : > { %v1768_v0 = vadd.f32 %v1767_v36, %v1766_v26 }
 0x7e3   : > { %v1774_v7 = vadd.f32 %v1773_v29, %v1772_v12 }
 0x7e4   : > { %v1769_v32 = vrot.slane %v1768_v0, 1 }
 0x7e5   : > { %v1775_v49 = vrot.slane %v1774_v7, 1 }
 0x7e6   : > { %v1770_v51 = vadd.f32 %v1769_v32, %v1768_v0 }
 0x7e7   : > { %v1776_v31 = vadd.f32 %v1775_v49, %v1774_v7 }
 0x7e8   : > { %v1777_v43 = vmul.f32 0.125, %v1770_v51 }
 0x7e9   : > { %v1778_v28 = vmul.f32 0.125, %v1776_v31 }
 0x7ea   : > { %v1779_v19 = vsub.f32 %v2948_v41, %v1777_v43 }
 0x7eb   : > { %v1780_v52 = vsub.f32 %v2951_v46, %v1778_v28 }
 0x7ec   : > { %v1781_v37 = vmul.f32 %v1779_v19, %v1779_v19 }
 0x7ed   : > { %v1782_v18 = vmul.f32 %v1780_v52, %v1780_v52 }
 0x7ee   : > { %v1783_v50 = vrot.slane %v1781_v37, 4 }
 0x7ef   : > { %v1789_v15 = vrot.slane %v1782_v18, 4 }
 0x7f0   : > { %v1784_v13 = vadd.f32 %v1783_v50, %v1781_v37 }
 0x7f1   : > { %v1790_v38 = vadd.f32 %v1789_v15, %v1782_v18 }
 0x7f2   : > { %v1785_v17 = vrot.slane %v1784_v13, 2 }
 0x7f3   : > { %v1791_v5 = vrot.slane %v1790_v38, 2 }
 0x7f4   : > { %v1786_v9 = vadd.f32 %v1785_v17, %v1784_v13 }
 0x7f5   : > { %v1792_v40 = vadd.f32 %v1791_v5, %v1790_v38 }
 0x7f6   : > { %v1787_v42 = vrot.slane %v1786_v9, 1 }
 0x7f7   : > { %v1793_v54 = vrot.slane %v1792_v40, 1 }
 0x7f8   : > { %v1788_v60 = vadd.f32 %v1787_v42, %v1786_v9 }
 0x7f9   : > { %v1794_v48 = vadd.f32 %v1793_v54, %v1792_v40 }
 0x7fa   : > { %v1795_v58 = vmul.f32 0.125, %v1788_v60 }
 0x7fb   : > { %v1796_v61 = vmul.f32 0.125, %v1794_v48 }
 0x7fc   : > { %v1797_v3 = vadd.f32 1e-05, %v1795_v58 }
 0x7fd   : > { %v1798_v25 = vadd.f32 1e-05, %v1796_v61 }
 0x7fe   : > { %2107 = vrsqrt.f32 %v1797_v3 }
 0x7ff   : > { %2109 = vrsqrt.f32 %v1798_v25 }
 0x808   : > { %v2108_v33 = vpop.eup %2107 }
 0x809   : > { %v2110_v62 = vpop.eup %2109  ;;  %v1801_v23 = vmul.f32 %v2108_v33, %v1779_v19 }
 0x80a   : > { %v1802_v11 = vmul.f32 %v2110_v62, %v1780_v52 }
 0x80b   : > { %v1809_v20 = vmul.f32 %v1807_v1, %v1801_v23 }
 0x80c   : > { %v1810_v47 = vmul.f32 %v1807_v1, %v1802_v11 }
 0x80d   : > { %v1817_v8 = vadd.f32 %v1815_v6, %v1809_v20 }
 0x80e   : > { %v1818_v59 = vadd.f32 %v1815_v6, %v1810_v47 }
 0x80f   : > { %v1820_v27 = vpack.c.bf16 %v1817_v8, %v1817_v8 }
 0x810   : > { %v1821_v63 = vpack.c.bf16 %v1818_v59, %v1818_v59 }
 0x811   : > { %v1826_v4 = vsel %vm463_vm0, %v1820_v27, 0 }
 0x812   : > { %1984 = vmatprep.subr.msk.bf16.mxu0 %vm463_vm0, %v1821_v63 }
 0x813   : > { %1832 = vmatpush1.bf16.msra.mxu0 %v1826_v4 }
 0x816   : > { %1985 = vmatmul.mubr.msk.bf16.vlgmr.msra.gmra.mrb[16].mxu0 %vm456_vm1, %v1819_v56 }
 0x8e9   : > { %v1865_v10 = vpop.f32.mrb[16].mxu0 }
 0x8ea   : > { %v1874_v2 = vmul.f32 0.70710677, %v1865_v10  ;;  %v1867_v57 = vpop.f32.mrb[17].mxu0  ;;  %v1872_v24 = vmul.f32 0.5, %v1865_v10 }
 0x8eb   : > { %v1875_v21 = vmul.f32 0.70710677, %v1867_v57  ;;  %v1869_v39 = vpop.f32.mrb[18].mxu0  ;;  %v1873_v22 = vmul.f32 0.5, %v1867_v57 }
 0x8ec   : > { %2111 = verf.f32 %v1874_v2  ;;  %v1870_v34 = vpop.f32.mrb[19].mxu0 }
 0x8ed   : > { %2113 = verf.f32 %v1875_v21 }
 0x8f6   : > { %v2112_v14 = vpop.eup %2111 }
 0x8f7   : > { %v2114_v30 = vpop.eup %2113  ;;  %v1878_v53 = vadd.f32 1.0, %v2112_v14 }
 0x8f8   : > { %v1879_v35 = vadd.f32 1.0, %v2114_v30 }
 0x8f9   : > { %v1880_v44 = vmul.f32 %v1878_v53, %v1872_v24 }
 0x8fa   : > { %v1881_v45 = vmul.f32 %v1879_v35, %v1873_v22 }
 0x8fb   : > { %v1882_v16 = vmul.f32 %v1880_v44, %v1865_v10 }
 0x8fc   : > { %v1883_v55 = vmul.f32 %v1881_v45, %v1867_v57 }
 0x8fd   : > { %v1884_v26 = vadd.f32 %v1882_v16, %v2948_v41 }
 0x8fe   : > { %v1885_v12 = vadd.f32 %v1883_v55, %v2951_v46 }
 0x8ff   : > { %1886 = vst [vmem:[%s379_s16] sm:$0xff] %v1884_v26 }
 0x900   : > { %1887 = vst [vmem:[%s379_s16 + $0x8] sm:$0xff] %v1885_v12 }
 0x901   : > { %2130 = shalt.err (!%p2127_p3)
}
 0x902   : > { %s2131_s29 = scalar_lea.hbm %s2972_s22, 256  ;;  %s2135_s14 = scalar_lea.hbm %s3025_s11, 512 }
 0x903   : > { %p2132_p4 = scmp.ne.s32.totalorder %s2972_s22, %s2131_s29  ;;  %p2136_p9 = scmp.lt.u32.totalorder %s2972_s22, %s3025_s11 }
 0x904   : > { %p2137_p10 = scmp.lt.u32.totalorder %s2135_s14, %s2131_s29  ;;  %p2139_p12 = scmp.lt.u32.totalorder %s2131_s29, %s2972_s22 }
 0x905   : > { %p2133_p7 = pnand %p2132_p4, %p2302_p5 }
 0x906   : > { %p2138_p11 = por %p2137_p10, %p2136_p9 }
 0x907   : > { %p2134_p8 = pneg %p2133_p7 }
 0x908   : > { %p2140_p13 = por %p2139_p12, %p2138_p11 }
 0x90a   : > { %p2141_p0 = pnand %p2140_p13, %p2134_p8 }
 0x90c   : > { %2144 = shalt.err (!%p2141_p0)
}
 0x90d   : > { %1997 = dma.vmem_to_hbm [thread:$0]  (%p2302_p5), %s2974_s15, 256, %s2972_s22, %s1889_s21  }
 0x90e PF: > { %p2003_p1 = scmp.ge.s32.totalorder %s2179_s20, 2  ;;  %s1915_s0 = sand.u32 1, %s2167_s17  }
 0x90f   : > { %s1916_s24 = scalar_lea.sflag [#allocation4], %s1915_s0 }
 0x910   : > { %p2000_p2 = pnand %p2003_p1, %p2306_p6 }
 0x912   : > { %2162 = dma.done.wait (!%p2000_p2), %s1916_s24, 256  }
 0x913   : > { %2164 = vsyncadd (!%p2000_p2), %s1916_s24, 4294967040  ;;  %p21_p3 = scmp.ge.s32.totalorder %s2289_s23, 4   ;;  %s3060_s17 = smov %s2171_s18 }
 0x914   : > { %s3061_s18 = smov %s2175_s19  ;;  %s3062_s19 = smov %s2300_s26 }
 0x915   : > { %s3063_s20 = smov %s2289_s23  ;;  %23 = sbr.rel (!%p21_p3) target bundleno = 5 (0x5), region = 100 }
 0x91c   :  { %1921 = vsyncpa [#allocation4], 1 }
 0x91d   :  { %1923 = vsyncpa [#allocation4 + $0x1], 1 }

</bundles_post_ra>
